<compile_context>
chip_gen: v7x
topology: tpu7x:2x2x1
jax: 0.10.0
libtpu: 0.0.40
codegen_flags: <defaults>
</compile_context>

<pallas_src>
import functools

import numpy as np
import jax
import jax.numpy as jnp
from jax import lax
from jax.experimental import pallas as pl
from jax.experimental.pallas import tpu as pltpu


# ----------------------------------------------------------------------------
# Fused forward kernel: conv1+ReLU -> conv2+ReLU -> 1x1 decoder -> bilinear up
# One grid step == one batch element; all intermediates live in vregs/VMEM.
# ----------------------------------------------------------------------------
def _fused_fwd_kernel(x_ref, g1_ref, w1_ref, b1_ref, g2_ref, w2_ref, b2_ref,
                      wd_ref, bd_ref, kt_ref, o_ref, *, taps):
    x = x_ref[0]                                            # (Cin, H*W)  channel-major

    # ---- conv1 (3x3, stride 2, pad 1) + ReLU, direct form:
    #      f1[co, m] = relu( sum_tap  W1_tap[co, ci] * x_gathered_tap[ci, m] + b1[co] )
    # The per-tap gather (shift + zero-pad + stride-2 subsample) is a 0/1 matrix G1[t]
    # applied on the MXU, so no strided slices / reshapes are needed in-kernel.
    acc1 = None
    for t in range(taps):
        gathered = jnp.dot(x, g1_ref[t], preferred_element_type=jnp.float32)      # (Cin, n1)
        contrib = jnp.dot(w1_ref[t], gathered, preferred_element_type=jnp.float32)  # (C1, n1)
        acc1 = contrib if acc1 is None else acc1 + contrib
    f1 = jnp.maximum(acc1 + b1_ref[...], 0.0)               # (C1, n1)   n1 = 8*8 = 64 lanes

    # ---- conv2 (3x3, stride 2, pad 1) + ReLU, same direct form on the VMEM-resident f1.
    acc2 = None
    for t in range(taps):
        gathered = jnp.dot(f1, g2_ref[t], preferred_element_type=jnp.float32)     # (C1, n2)
        contrib = jnp.dot(w2_ref[t], gathered, preferred_element_type=jnp.float32)  # (C2, n2)
        acc2 = contrib if acc2 is None else acc2 + contrib
    f2 = jnp.maximum(acc2 + b2_ref[...], 0.0)               # (C2, n2)   n2 = 4*4 = 16

    # ---- decoder: 1x1 conv to class logits (kept channel-major: (NC, n2)).
    dec = jnp.dot(wd_ref[...], f2, preferred_element_type=jnp.float32) + bd_ref[...]

    # ---- bilinear upsample (align_corners=False) folded into one matmul with the
    #      Kronecker matrix (Rh ⊗ Rw)^T.  Output is lane-dense: (NC, H*W = 256).
    up = jnp.dot(dec, kt_ref[...], preferred_element_type=jnp.float32)
    o_ref[0] = up.astype(o_ref.dtype)


# ----------------------------------------------------------------------------
# Init-time operator construction (pure numpy; done once, never per forward)
# ----------------------------------------------------------------------------
def _conv_gather_mats(h_in, w_in, k, stride, pad):
    """Per-tap gather matrices G[t] of shape (h_in*w_in, h_out*w_out).

    (x_cm @ G[t])[c, m] == zero-padded input at (stride*i + di - pad, stride*j + dj - pad)
    for output position m = i*w_out + j and tap t = di*k + dj.
    """
    h_out = (h_in + 2 * pad - k) // stride + 1
    w_out = (w_in + 2 * pad - k) // stride + 1
    G = np.zeros((k * k, h_in * w_in, h_out * w_out), np.float32)
    for di in range(k):
        for dj in range(k):
            t = di * k + dj
            for i in range(h_out):
                for j in range(w_out):
                    r = stride * i + di - pad
                    c = stride * j + dj - pad
                    if 0 <= r < h_in and 0 <= c < w_in:
                        G[t, r * w_in + c, i * w_out + j] = 1.0
    return G, h_out, w_out


def _interp_matrix(out_size, in_size):
    # Exact PyTorch F.interpolate(mode='bilinear', align_corners=False) weights.
    scale = in_size / out_size
    R = np.zeros((out_size, in_size), np.float32)
    for i in range(out_size):
        src = max((i + 0.5) * scale - 0.5, 0.0)
        i0 = min(int(np.floor(src)), in_size - 1)
        i1 = min(i0 + 1, in_size - 1)
        lam = src - i0
        R[i, i0] += 1.0 - lam
        R[i, i1] += lam
    return R


# ----------------------------------------------------------------------------
# Concrete encoder / decoder parameters (deterministic synthetic init)
# ----------------------------------------------------------------------------
def init_params(key, cin=4, c1=8, c2=16, num_classes=3):
    k1, k2, k3, k4, k5, k6 = jax.random.split(key, 6)
    return {
        "w1": jax.random.normal(k1, (3 * 3 * cin, c1), jnp.float32) * 0.1,
        "b1": jax.random.normal(k2, (c1,), jnp.float32) * 0.01,
        "w2": jax.random.normal(k3, (3 * 3 * c1, c2), jnp.float32) * 0.1,
        "b2": jax.random.normal(k4, (c2,), jnp.float32) * 0.01,
        "wd": jax.random.normal(k5, (c2, num_classes), jnp.float32) * 0.1,
        "bd": jax.random.normal(k6, (num_classes,), jnp.float32) * 0.01,
    }


def pack_params(params, H, W):
    """One-time packing: per-tap transposed conv weights, column biases, gather matrices
    for in-kernel im2col, and the Kronecker bilinear-upsample matrix."""
    cin = params["w1"].shape[0] // 9
    c1 = params["w1"].shape[1]
    c2 = params["w2"].shape[1]
    nc = params["wd"].shape[1]

    G1, h1, w1o = _conv_gather_mats(H, W, k=3, stride=2, pad=1)     # (9, H*W,   h1*w1o)
    G2, h2, w2o = _conv_gather_mats(h1, w1o, k=3, stride=2, pad=1)  # (9, h1*w1o, h2*w2o)
    Rh = _interp_matrix(H, h2)                                      # (H, h2)
    Rw = _interp_matrix(W, w2o)                                     # (W, w2o)
    KT = np.kron(Rh, Rw).T                                          # (h2*w2o, H*W)

    return {
        "g1": jnp.asarray(G1),
        "w1": jnp.transpose(params["w1"].reshape(9, cin, c1), (0, 2, 1)),  # (9, C1, Cin)
        "b1": params["b1"].reshape(c1, 1),
        "g2": jnp.asarray(G2),
        "w2": jnp.transpose(params["w2"].reshape(9, c1, c2), (0, 2, 1)),   # (9, C2, C1)
        "b2": params["b2"].reshape(c2, 1),
        "wd": params["wd"].T,                                              # (NC, C2)
        "bd": params["bd"].reshape(nc, 1),
        "kt": jnp.asarray(KT),
    }


# ----------------------------------------------------------------------------
# Forward: one pallas_call, grid over batch ("parallel" -> 2 TCs on v7x)
# ----------------------------------------------------------------------------
def encoder_decoder_forward(packed, x_nchw):
    """Mirrors EncoderDecoder.forward: encoder -> decoder -> bilinear to (H, W), NCHW out."""
    B, Cin, H, W = x_nchw.shape
    g1, w1, b1 = packed["g1"], packed["w1"], packed["b1"]
    g2, w2, b2 = packed["g2"], packed["w2"], packed["b2"]
    wd, bd, kt = packed["wd"], packed["bd"], packed["kt"]
    NC = wd.shape[0]
    HW = H * W

    # NCHW is already channel-major per batch element: a free reshape, no relayout.
    x_cm = x_nchw.reshape(B, Cin, HW)

    kernel = functools.partial(_fused_fwd_kernel, taps=g1.shape[0])
    out = pl.pallas_call(
        kernel,
        out_shape=jax.ShapeDtypeStruct((B, NC, HW), jnp.float32),
        grid=(B,),
        in_specs=[
            pl.BlockSpec((1, Cin, HW), lambda b: (b, 0, 0)),   # raw input, one batch elem
            pl.BlockSpec(g1.shape, lambda b: (0, 0, 0)),       # grid-invariant operands:
            pl.BlockSpec(w1.shape, lambda b: (0, 0, 0)),       # fetched once, reused
            pl.BlockSpec(b1.shape, lambda b: (0, 0)),
            pl.BlockSpec(g2.shape, lambda b: (0, 0, 0)),
            pl.BlockSpec(w2.shape, lambda b: (0, 0, 0)),
            pl.BlockSpec(b2.shape, lambda b: (0, 0)),
            pl.BlockSpec(wd.shape, lambda b: (0, 0)),
            pl.BlockSpec(bd.shape, lambda b: (0, 0)),
            pl.BlockSpec(kt.shape, lambda b: (0, 0)),
        ],
        out_specs=pl.BlockSpec((1, NC, HW), lambda b: (b, 0, 0)),  # lane-dense (NC, 256)
        compiler_params=pltpu.CompilerParams(
            dimension_semantics=("parallel",)),                    # megacore on v7x
    )(x_cm, g1, w1, b1, g2, w2, b2, wd, bd, kt)

    return out.reshape(B, NC, H, W)                                # free reshape to NCHW
    # TODO(synk): EncoderDecoder.train() only toggles decoder training mode (no forward compute).


# ----------------------------------------------------------------------------
# Pure-JAX reference for validation (independent path: lax.conv + einsum interp)
# ----------------------------------------------------------------------------
def reference_forward(params, x_nchw):
    B, Cin, H, W = x_nchw.shape
    x = x_nchw.transpose(0, 2, 3, 1)

    def conv(xx, wmat, b, cin, cout, relu):
        wk = wmat.reshape(3, 3, cin, cout)
        y = lax.conv_general_dilated(
            xx, wk, (2, 2), [(1, 1), (1, 1)],
            dimension_numbers=("NHWC", "HWIO", "NHWC")) + b
        return jnp.maximum(y, 0.0) if relu else y

    c1 = params["w1"].shape[1]
    c2 = params["w2"].shape[1]
    f = conv(x, params["w1"], params["b1"], Cin, c1, True)
    f = conv(f, params["w2"], params["b2"], c1, c2, True)
    logits = jnp.einsum("bhwc,cn->bhwn", f, params["wd"]) + params["bd"]
    h, w = logits.shape[1:3]
    Rh = jnp.asarray(_interp_matrix(H, h))
    Rw = jnp.asarray(_interp_matrix(W, w))
    out = jnp.einsum("Hh,bhwc->bHwc", Rh, logits)
    out = jnp.einsum("Ww,bHwc->bHWc", Rw, out)
    return out.transpose(0, 3, 1, 2)


if __name__ == "__main__":
    key = jax.random.PRNGKey(0)
    kx, kp = jax.random.split(key)
    x = jax.random.normal(kx, (2, 4, 16, 16), jnp.float32)  # NCHW, like PyTorch
    params = init_params(kp)
    packed = pack_params(params, 16, 16)                    # one-time weight/operator packing

    fwd = jax.jit(encoder_decoder_forward)
    out = jax.block_until_ready(fwd(packed, x))

    assert out.shape == (2, 3, 16, 16), out.shape
    ref = reference_forward(params, x)
    np.testing.assert_allclose(np.asarray(out), np.asarray(ref), atol=1e-4, rtol=1e-4)
    print("KERNEL_OK")
</pallas_src>

<mosaic_0001>
module attributes {stable_mosaic.version = 11 : i64} {
  func.func @_fused_fwd_kernel(%arg0: i32, %arg1: memref<1x4x256xf32, #tpu.memory_space<vmem>>, %arg2: memref<9x256x64xf32, #tpu.memory_space<vmem>>, %arg3: memref<9x8x4xf32, #tpu.memory_space<vmem>>, %arg4: memref<8x1xf32, #tpu.memory_space<vmem>>, %arg5: memref<9x64x16xf32, #tpu.memory_space<vmem>>, %arg6: memref<9x16x8xf32, #tpu.memory_space<vmem>>, %arg7: memref<16x1xf32, #tpu.memory_space<vmem>>, %arg8: memref<3x16xf32, #tpu.memory_space<vmem>>, %arg9: memref<3x1xf32, #tpu.memory_space<vmem>>, %arg10: memref<16x256xf32, #tpu.memory_space<vmem>>, %arg11: memref<1x3x256xf32, #tpu.memory_space<vmem>>) attributes {dimension_semantics = [#tpu.dimension_semantics<parallel>], iteration_bounds = array<i64: 2>, scalar_prefetch = 0 : i64, scratch_operands = 0 : i64, tpu.core_type = #tpu.core_type<tc>, window_params = [{transform_indices = @transform_0, window_bounds = array<i64: 1, 4, 256>}, {pipeline_mode = #tpu.pipeline_mode<synchronous>, transform_indices = @transform_1, window_bounds = array<i64: 9, 256, 64>}, {pipeline_mode = #tpu.pipeline_mode<synchronous>, transform_indices = @transform_2, window_bounds = array<i64: 9, 8, 4>}, {pipeline_mode = #tpu.pipeline_mode<synchronous>, transform_indices = @transform_3, window_bounds = array<i64: 8, 1>}, {pipeline_mode = #tpu.pipeline_mode<synchronous>, transform_indices = @transform_4, window_bounds = array<i64: 9, 64, 16>}, {pipeline_mode = #tpu.pipeline_mode<synchronous>, transform_indices = @transform_5, window_bounds = array<i64: 9, 16, 8>}, {pipeline_mode = #tpu.pipeline_mode<synchronous>, transform_indices = @transform_6, window_bounds = array<i64: 16, 1>}, {pipeline_mode = #tpu.pipeline_mode<synchronous>, transform_indices = @transform_7, window_bounds = array<i64: 3, 16>}, {pipeline_mode = #tpu.pipeline_mode<synchronous>, transform_indices = @transform_8, window_bounds = array<i64: 3, 1>}, {pipeline_mode = #tpu.pipeline_mode<synchronous>, transform_indices = @transform_9, window_bounds = array<i64: 16, 256>}, {transform_indices = @transform_10, window_bounds = array<i64: 1, 3, 256>}]} {
    %c0 = arith.constant 0 : index
    %c0_0 = arith.constant 0 : index
    %c0_1 = arith.constant 0 : index
    %0 = vector.load %arg1[%c0, %c0_0, %c0_1] : memref<1x4x256xf32, #tpu.memory_space<vmem>>, vector<1x4x256xf32>
    %1 = vector.shape_cast %0 : vector<1x4x256xf32> to vector<4x256xf32>
    %c0_2 = arith.constant 0 : index
    %c0_3 = arith.constant 0 : index
    %c0_4 = arith.constant 0 : index
    %2 = vector.load %arg2[%c0_2, %c0_3, %c0_4] : memref<9x256x64xf32, #tpu.memory_space<vmem>>, vector<1x256x64xf32>
    %3 = vector.shape_cast %2 : vector<1x256x64xf32> to vector<256x64xf32>
    %cst = arith.constant dense<0.000000e+00> : vector<4x64xf32>
    %4 = tpu.matmul %1, %3, %cst {dimension_numbers = #tpu.dot_dimension_numbers<[1], [0], [0], [1], [0, 0, 1, 1], [], []>} : vector<4x256xf32>, vector<256x64xf32>, vector<4x64xf32> -> vector<4x64xf32>
    %c0_5 = arith.constant 0 : index
    %c0_6 = arith.constant 0 : index
    %c0_7 = arith.constant 0 : index
    %5 = vector.load %arg3[%c0_5, %c0_6, %c0_7] : memref<9x8x4xf32, #tpu.memory_space<vmem>>, vector<1x8x4xf32>
    %6 = vector.shape_cast %5 : vector<1x8x4xf32> to vector<8x4xf32>
    %cst_8 = arith.constant dense<0.000000e+00> : vector<8x64xf32>
    %7 = tpu.matmul %6, %4, %cst_8 {dimension_numbers = #tpu.dot_dimension_numbers<[1], [0], [0], [1], [0, 0, 1, 1], [], []>} : vector<8x4xf32>, vector<4x64xf32>, vector<8x64xf32> -> vector<8x64xf32>
    %c1 = arith.constant 1 : index
    %c0_9 = arith.constant 0 : index
    %c0_10 = arith.constant 0 : index
    %8 = vector.load %arg2[%c1, %c0_9, %c0_10] : memref<9x256x64xf32, #tpu.memory_space<vmem>>, vector<1x256x64xf32>
    %9 = vector.shape_cast %8 : vector<1x256x64xf32> to vector<256x64xf32>
    %cst_11 = arith.constant dense<0.000000e+00> : vector<4x64xf32>
    %10 = tpu.matmul %1, %9, %cst_11 {dimension_numbers = #tpu.dot_dimension_numbers<[1], [0], [0], [1], [0, 0, 1, 1], [], []>} : vector<4x256xf32>, vector<256x64xf32>, vector<4x64xf32> -> vector<4x64xf32>
    %c1_12 = arith.constant 1 : index
    %c0_13 = arith.constant 0 : index
    %c0_14 = arith.constant 0 : index
    %11 = vector.load %arg3[%c1_12, %c0_13, %c0_14] : memref<9x8x4xf32, #tpu.memory_space<vmem>>, vector<1x8x4xf32>
    %12 = vector.shape_cast %11 : vector<1x8x4xf32> to vector<8x4xf32>
    %cst_15 = arith.constant dense<0.000000e+00> : vector<8x64xf32>
    %13 = tpu.matmul %12, %10, %cst_15 {dimension_numbers = #tpu.dot_dimension_numbers<[1], [0], [0], [1], [0, 0, 1, 1], [], []>} : vector<8x4xf32>, vector<4x64xf32>, vector<8x64xf32> -> vector<8x64xf32>
    %14 = arith.addf %7, %13 : vector<8x64xf32>
    %c2 = arith.constant 2 : index
    %c0_16 = arith.constant 0 : index
    %c0_17 = arith.constant 0 : index
    %15 = vector.load %arg2[%c2, %c0_16, %c0_17] : memref<9x256x64xf32, #tpu.memory_space<vmem>>, vector<1x256x64xf32>
    %16 = vector.shape_cast %15 : vector<1x256x64xf32> to vector<256x64xf32>
    %cst_18 = arith.constant dense<0.000000e+00> : vector<4x64xf32>
    %17 = tpu.matmul %1, %16, %cst_18 {dimension_numbers = #tpu.dot_dimension_numbers<[1], [0], [0], [1], [0, 0, 1, 1], [], []>} : vector<4x256xf32>, vector<256x64xf32>, vector<4x64xf32> -> vector<4x64xf32>
    %c2_19 = arith.constant 2 : index
    %c0_20 = arith.constant 0 : index
    %c0_21 = arith.constant 0 : index
    %18 = vector.load %arg3[%c2_19, %c0_20, %c0_21] : memref<9x8x4xf32, #tpu.memory_space<vmem>>, vector<1x8x4xf32>
    %19 = vector.shape_cast %18 : vector<1x8x4xf32> to vector<8x4xf32>
    %cst_22 = arith.constant dense<0.000000e+00> : vector<8x64xf32>
    %20 = tpu.matmul %19, %17, %cst_22 {dimension_numbers = #tpu.dot_dimension_numbers<[1], [0], [0], [1], [0, 0, 1, 1], [], []>} : vector<8x4xf32>, vector<4x64xf32>, vector<8x64xf32> -> vector<8x64xf32>
    %21 = arith.addf %14, %20 : vector<8x64xf32>
    %c3 = arith.constant 3 : index
    %c0_23 = arith.constant 0 : index
    %c0_24 = arith.constant 0 : index
    %22 = vector.load %arg2[%c3, %c0_23, %c0_24] : memref<9x256x64xf32, #tpu.memory_space<vmem>>, vector<1x256x64xf32>
    %23 = vector.shape_cast %22 : vector<1x256x64xf32> to vector<256x64xf32>
    %cst_25 = arith.constant dense<0.000000e+00> : vector<4x64xf32>
    %24 = tpu.matmul %1, %23, %cst_25 {dimension_numbers = #tpu.dot_dimension_numbers<[1], [0], [0], [1], [0, 0, 1, 1], [], []>} : vector<4x256xf32>, vector<256x64xf32>, vector<4x64xf32> -> vector<4x64xf32>
    %c3_26 = arith.constant 3 : index
    %c0_27 = arith.constant 0 : index
    %c0_28 = arith.constant 0 : index
    %25 = vector.load %arg3[%c3_26, %c0_27, %c0_28] : memref<9x8x4xf32, #tpu.memory_space<vmem>>, vector<1x8x4xf32>
    %26 = vector.shape_cast %25 : vector<1x8x4xf32> to vector<8x4xf32>
    %cst_29 = arith.constant dense<0.000000e+00> : vector<8x64xf32>
    %27 = tpu.matmul %26, %24, %cst_29 {dimension_numbers = #tpu.dot_dimension_numbers<[1], [0], [0], [1], [0, 0, 1, 1], [], []>} : vector<8x4xf32>, vector<4x64xf32>, vector<8x64xf32> -> vector<8x64xf32>
    %28 = arith.addf %21, %27 : vector<8x64xf32>
    %c4 = arith.constant 4 : index
    %c0_30 = arith.constant 0 : index
    %c0_31 = arith.constant 0 : index
    %29 = vector.load %arg2[%c4, %c0_30, %c0_31] : memref<9x256x64xf32, #tpu.memory_space<vmem>>, vector<1x256x64xf32>
    %30 = vector.shape_cast %29 : vector<1x256x64xf32> to vector<256x64xf32>
    %cst_32 = arith.constant dense<0.000000e+00> : vector<4x64xf32>
    %31 = tpu.matmul %1, %30, %cst_32 {dimension_numbers = #tpu.dot_dimension_numbers<[1], [0], [0], [1], [0, 0, 1, 1], [], []>} : vector<4x256xf32>, vector<256x64xf32>, vector<4x64xf32> -> vector<4x64xf32>
    %c4_33 = arith.constant 4 : index
    %c0_34 = arith.constant 0 : index
    %c0_35 = arith.constant 0 : index
    %32 = vector.load %arg3[%c4_33, %c0_34, %c0_35] : memref<9x8x4xf32, #tpu.memory_space<vmem>>, vector<1x8x4xf32>
    %33 = vector.shape_cast %32 : vector<1x8x4xf32> to vector<8x4xf32>
    %cst_36 = arith.constant dense<0.000000e+00> : vector<8x64xf32>
    %34 = tpu.matmul %33, %31, %cst_36 {dimension_numbers = #tpu.dot_dimension_numbers<[1], [0], [0], [1], [0, 0, 1, 1], [], []>} : vector<8x4xf32>, vector<4x64xf32>, vector<8x64xf32> -> vector<8x64xf32>
    %35 = arith.addf %28, %34 : vector<8x64xf32>
    %c5 = arith.constant 5 : index
    %c0_37 = arith.constant 0 : index
    %c0_38 = arith.constant 0 : index
    %36 = vector.load %arg2[%c5, %c0_37, %c0_38] : memref<9x256x64xf32, #tpu.memory_space<vmem>>, vector<1x256x64xf32>
    %37 = vector.shape_cast %36 : vector<1x256x64xf32> to vector<256x64xf32>
    %cst_39 = arith.constant dense<0.000000e+00> : vector<4x64xf32>
    %38 = tpu.matmul %1, %37, %cst_39 {dimension_numbers = #tpu.dot_dimension_numbers<[1], [0], [0], [1], [0, 0, 1, 1], [], []>} : vector<4x256xf32>, vector<256x64xf32>, vector<4x64xf32> -> vector<4x64xf32>
    %c5_40 = arith.constant 5 : index
    %c0_41 = arith.constant 0 : index
    %c0_42 = arith.constant 0 : index
    %39 = vector.load %arg3[%c5_40, %c0_41, %c0_42] : memref<9x8x4xf32, #tpu.memory_space<vmem>>, vector<1x8x4xf32>
    %40 = vector.shape_cast %39 : vector<1x8x4xf32> to vector<8x4xf32>
    %cst_43 = arith.constant dense<0.000000e+00> : vector<8x64xf32>
    %41 = tpu.matmul %40, %38, %cst_43 {dimension_numbers = #tpu.dot_dimension_numbers<[1], [0], [0], [1], [0, 0, 1, 1], [], []>} : vector<8x4xf32>, vector<4x64xf32>, vector<8x64xf32> -> vector<8x64xf32>
    %42 = arith.addf %35, %41 : vector<8x64xf32>
    %c6 = arith.constant 6 : index
    %c0_44 = arith.constant 0 : index
    %c0_45 = arith.constant 0 : index
    %43 = vector.load %arg2[%c6, %c0_44, %c0_45] : memref<9x256x64xf32, #tpu.memory_space<vmem>>, vector<1x256x64xf32>
    %44 = vector.shape_cast %43 : vector<1x256x64xf32> to vector<256x64xf32>
    %cst_46 = arith.constant dense<0.000000e+00> : vector<4x64xf32>
    %45 = tpu.matmul %1, %44, %cst_46 {dimension_numbers = #tpu.dot_dimension_numbers<[1], [0], [0], [1], [0, 0, 1, 1], [], []>} : vector<4x256xf32>, vector<256x64xf32>, vector<4x64xf32> -> vector<4x64xf32>
    %c6_47 = arith.constant 6 : index
    %c0_48 = arith.constant 0 : index
    %c0_49 = arith.constant 0 : index
    %46 = vector.load %arg3[%c6_47, %c0_48, %c0_49] : memref<9x8x4xf32, #tpu.memory_space<vmem>>, vector<1x8x4xf32>
    %47 = vector.shape_cast %46 : vector<1x8x4xf32> to vector<8x4xf32>
    %cst_50 = arith.constant dense<0.000000e+00> : vector<8x64xf32>
    %48 = tpu.matmul %47, %45, %cst_50 {dimension_numbers = #tpu.dot_dimension_numbers<[1], [0], [0], [1], [0, 0, 1, 1], [], []>} : vector<8x4xf32>, vector<4x64xf32>, vector<8x64xf32> -> vector<8x64xf32>
    %49 = arith.addf %42, %48 : vector<8x64xf32>
    %c7 = arith.constant 7 : index
    %c0_51 = arith.constant 0 : index
    %c0_52 = arith.constant 0 : index
    %50 = vector.load %arg2[%c7, %c0_51, %c0_52] : memref<9x256x64xf32, #tpu.memory_space<vmem>>, vector<1x256x64xf32>
    %51 = vector.shape_cast %50 : vector<1x256x64xf32> to vector<256x64xf32>
    %cst_53 = arith.constant dense<0.000000e+00> : vector<4x64xf32>
    %52 = tpu.matmul %1, %51, %cst_53 {dimension_numbers = #tpu.dot_dimension_numbers<[1], [0], [0], [1], [0, 0, 1, 1], [], []>} : vector<4x256xf32>, vector<256x64xf32>, vector<4x64xf32> -> vector<4x64xf32>
    %c7_54 = arith.constant 7 : index
    %c0_55 = arith.constant 0 : index
    %c0_56 = arith.constant 0 : index
    %53 = vector.load %arg3[%c7_54, %c0_55, %c0_56] : memref<9x8x4xf32, #tpu.memory_space<vmem>>, vector<1x8x4xf32>
    %54 = vector.shape_cast %53 : vector<1x8x4xf32> to vector<8x4xf32>
    %cst_57 = arith.constant dense<0.000000e+00> : vector<8x64xf32>
    %55 = tpu.matmul %54, %52, %cst_57 {dimension_numbers = #tpu.dot_dimension_numbers<[1], [0], [0], [1], [0, 0, 1, 1], [], []>} : vector<8x4xf32>, vector<4x64xf32>, vector<8x64xf32> -> vector<8x64xf32>
    %56 = arith.addf %49, %55 : vector<8x64xf32>
    %c8 = arith.constant 8 : index
    %c0_58 = arith.constant 0 : index
    %c0_59 = arith.constant 0 : index
    %57 = vector.load %arg2[%c8, %c0_58, %c0_59] : memref<9x256x64xf32, #tpu.memory_space<vmem>>, vector<1x256x64xf32>
    %58 = vector.shape_cast %57 : vector<1x256x64xf32> to vector<256x64xf32>
    %cst_60 = arith.constant dense<0.000000e+00> : vector<4x64xf32>
    %59 = tpu.matmul %1, %58, %cst_60 {dimension_numbers = #tpu.dot_dimension_numbers<[1], [0], [0], [1], [0, 0, 1, 1], [], []>} : vector<4x256xf32>, vector<256x64xf32>, vector<4x64xf32> -> vector<4x64xf32>
    %c8_61 = arith.constant 8 : index
    %c0_62 = arith.constant 0 : index
    %c0_63 = arith.constant 0 : index
    %60 = vector.load %arg3[%c8_61, %c0_62, %c0_63] : memref<9x8x4xf32, #tpu.memory_space<vmem>>, vector<1x8x4xf32>
    %61 = vector.shape_cast %60 : vector<1x8x4xf32> to vector<8x4xf32>
    %cst_64 = arith.constant dense<0.000000e+00> : vector<8x64xf32>
    %62 = tpu.matmul %61, %59, %cst_64 {dimension_numbers = #tpu.dot_dimension_numbers<[1], [0], [0], [1], [0, 0, 1, 1], [], []>} : vector<8x4xf32>, vector<4x64xf32>, vector<8x64xf32> -> vector<8x64xf32>
    %63 = arith.addf %56, %62 : vector<8x64xf32>
    %c0_65 = arith.constant 0 : index
    %c0_66 = arith.constant 0 : index
    %64 = vector.load %arg4[%c0_65, %c0_66] : memref<8x1xf32, #tpu.memory_space<vmem>>, vector<8x1xf32>
    %65 = vector.broadcast %64 : vector<8x1xf32> to vector<8x64xf32>
    %66 = arith.addf %63, %65 : vector<8x64xf32>
    %cst_67 = arith.constant 0.000000e+00 : f32
    %67 = vector.broadcast %cst_67 : f32 to vector<8x64xf32>
    %68 = arith.maximumf %66, %67 : vector<8x64xf32>
    %c0_68 = arith.constant 0 : index
    %c0_69 = arith.constant 0 : index
    %c0_70 = arith.constant 0 : index
    %69 = vector.load %arg5[%c0_68, %c0_69, %c0_70] : memref<9x64x16xf32, #tpu.memory_space<vmem>>, vector<1x64x16xf32>
    %70 = vector.shape_cast %69 : vector<1x64x16xf32> to vector<64x16xf32>
    %cst_71 = arith.constant dense<0.000000e+00> : vector<8x16xf32>
    %71 = tpu.matmul %68, %70, %cst_71 {dimension_numbers = #tpu.dot_dimension_numbers<[1], [0], [0], [1], [0, 0, 1, 1], [], []>} : vector<8x64xf32>, vector<64x16xf32>, vector<8x16xf32> -> vector<8x16xf32>
    %c0_72 = arith.constant 0 : index
    %c0_73 = arith.constant 0 : index
    %c0_74 = arith.constant 0 : index
    %72 = vector.load %arg6[%c0_72, %c0_73, %c0_74] : memref<9x16x8xf32, #tpu.memory_space<vmem>>, vector<1x16x8xf32>
    %73 = vector.shape_cast %72 : vector<1x16x8xf32> to vector<16x8xf32>
    %cst_75 = arith.constant dense<0.000000e+00> : vector<16x16xf32>
    %74 = tpu.matmul %73, %71, %cst_75 {dimension_numbers = #tpu.dot_dimension_numbers<[1], [0], [0], [1], [0, 0, 1, 1], [], []>} : vector<16x8xf32>, vector<8x16xf32>, vector<16x16xf32> -> vector<16x16xf32>
    %c1_76 = arith.constant 1 : index
    %c0_77 = arith.constant 0 : index
    %c0_78 = arith.constant 0 : index
    %75 = vector.load %arg5[%c1_76, %c0_77, %c0_78] : memref<9x64x16xf32, #tpu.memory_space<vmem>>, vector<1x64x16xf32>
    %76 = vector.shape_cast %75 : vector<1x64x16xf32> to vector<64x16xf32>
    %cst_79 = arith.constant dense<0.000000e+00> : vector<8x16xf32>
    %77 = tpu.matmul %68, %76, %cst_79 {dimension_numbers = #tpu.dot_dimension_numbers<[1], [0], [0], [1], [0, 0, 1, 1], [], []>} : vector<8x64xf32>, vector<64x16xf32>, vector<8x16xf32> -> vector<8x16xf32>
    %c1_80 = arith.constant 1 : index
    %c0_81 = arith.constant 0 : index
    %c0_82 = arith.constant 0 : index
    %78 = vector.load %arg6[%c1_80, %c0_81, %c0_82] : memref<9x16x8xf32, #tpu.memory_space<vmem>>, vector<1x16x8xf32>
    %79 = vector.shape_cast %78 : vector<1x16x8xf32> to vector<16x8xf32>
    %cst_83 = arith.constant dense<0.000000e+00> : vector<16x16xf32>
    %80 = tpu.matmul %79, %77, %cst_83 {dimension_numbers = #tpu.dot_dimension_numbers<[1], [0], [0], [1], [0, 0, 1, 1], [], []>} : vector<16x8xf32>, vector<8x16xf32>, vector<16x16xf32> -> vector<16x16xf32>
    %81 = arith.addf %74, %80 : vector<16x16xf32>
    %c2_84 = arith.constant 2 : index
    %c0_85 = arith.constant 0 : index
    %c0_86 = arith.constant 0 : index
    %82 = vector.load %arg5[%c2_84, %c0_85, %c0_86] : memref<9x64x16xf32, #tpu.memory_space<vmem>>, vector<1x64x16xf32>
    %83 = vector.shape_cast %82 : vector<1x64x16xf32> to vector<64x16xf32>
    %cst_87 = arith.constant dense<0.000000e+00> : vector<8x16xf32>
    %84 = tpu.matmul %68, %83, %cst_87 {dimension_numbers = #tpu.dot_dimension_numbers<[1], [0], [0], [1], [0, 0, 1, 1], [], []>} : vector<8x64xf32>, vector<64x16xf32>, vector<8x16xf32> -> vector<8x16xf32>
    %c2_88 = arith.constant 2 : index
    %c0_89 = arith.constant 0 : index
    %c0_90 = arith.constant 0 : index
    %85 = vector.load %arg6[%c2_88, %c0_89, %c0_90] : memref<9x16x8xf32, #tpu.memory_space<vmem>>, vector<1x16x8xf32>
    %86 = vector.shape_cast %85 : vector<1x16x8xf32> to vector<16x8xf32>
    %cst_91 = arith.constant dense<0.000000e+00> : vector<16x16xf32>
    %87 = tpu.matmul %86, %84, %cst_91 {dimension_numbers = #tpu.dot_dimension_numbers<[1], [0], [0], [1], [0, 0, 1, 1], [], []>} : vector<16x8xf32>, vector<8x16xf32>, vector<16x16xf32> -> vector<16x16xf32>
    %88 = arith.addf %81, %87 : vector<16x16xf32>
    %c3_92 = arith.constant 3 : index
    %c0_93 = arith.constant 0 : index
    %c0_94 = arith.constant 0 : index
    %89 = vector.load %arg5[%c3_92, %c0_93, %c0_94] : memref<9x64x16xf32, #tpu.memory_space<vmem>>, vector<1x64x16xf32>
    %90 = vector.shape_cast %89 : vector<1x64x16xf32> to vector<64x16xf32>
    %cst_95 = arith.constant dense<0.000000e+00> : vector<8x16xf32>
    %91 = tpu.matmul %68, %90, %cst_95 {dimension_numbers = #tpu.dot_dimension_numbers<[1], [0], [0], [1], [0, 0, 1, 1], [], []>} : vector<8x64xf32>, vector<64x16xf32>, vector<8x16xf32> -> vector<8x16xf32>
    %c3_96 = arith.constant 3 : index
    %c0_97 = arith.constant 0 : index
    %c0_98 = arith.constant 0 : index
    %92 = vector.load %arg6[%c3_96, %c0_97, %c0_98] : memref<9x16x8xf32, #tpu.memory_space<vmem>>, vector<1x16x8xf32>
    %93 = vector.shape_cast %92 : vector<1x16x8xf32> to vector<16x8xf32>
    %cst_99 = arith.constant dense<0.000000e+00> : vector<16x16xf32>
    %94 = tpu.matmul %93, %91, %cst_99 {dimension_numbers = #tpu.dot_dimension_numbers<[1], [0], [0], [1], [0, 0, 1, 1], [], []>} : vector<16x8xf32>, vector<8x16xf32>, vector<16x16xf32> -> vector<16x16xf32>
    %95 = arith.addf %88, %94 : vector<16x16xf32>
    %c4_100 = arith.constant 4 : index
    %c0_101 = arith.constant 0 : index
    %c0_102 = arith.constant 0 : index
    %96 = vector.load %arg5[%c4_100, %c0_101, %c0_102] : memref<9x64x16xf32, #tpu.memory_space<vmem>>, vector<1x64x16xf32>
    %97 = vector.shape_cast %96 : vector<1x64x16xf32> to vector<64x16xf32>
    %cst_103 = arith.constant dense<0.000000e+00> : vector<8x16xf32>
    %98 = tpu.matmul %68, %97, %cst_103 {dimension_numbers = #tpu.dot_dimension_numbers<[1], [0], [0], [1], [0, 0, 1, 1], [], []>} : vector<8x64xf32>, vector<64x16xf32>, vector<8x16xf32> -> vector<8x16xf32>
    %c4_104 = arith.constant 4 : index
    %c0_105 = arith.constant 0 : index
    %c0_106 = arith.constant 0 : index
    %99 = vector.load %arg6[%c4_104, %c0_105, %c0_106] : memref<9x16x8xf32, #tpu.memory_space<vmem>>, vector<1x16x8xf32>
    %100 = vector.shape_cast %99 : vector<1x16x8xf32> to vector<16x8xf32>
    %cst_107 = arith.constant dense<0.000000e+00> : vector<16x16xf32>
    %101 = tpu.matmul %100, %98, %cst_107 {dimension_numbers = #tpu.dot_dimension_numbers<[1], [0], [0], [1], [0, 0, 1, 1], [], []>} : vector<16x8xf32>, vector<8x16xf32>, vector<16x16xf32> -> vector<16x16xf32>
    %102 = arith.addf %95, %101 : vector<16x16xf32>
    %c5_108 = arith.constant 5 : index
    %c0_109 = arith.constant 0 : index
    %c0_110 = arith.constant 0 : index
    %103 = vector.load %arg5[%c5_108, %c0_109, %c0_110] : memref<9x64x16xf32, #tpu.memory_space<vmem>>, vector<1x64x16xf32>
    %104 = vector.shape_cast %103 : vector<1x64x16xf32> to vector<64x16xf32>
    %cst_111 = arith.constant dense<0.000000e+00> : vector<8x16xf32>
    %105 = tpu.matmul %68, %104, %cst_111 {dimension_numbers = #tpu.dot_dimension_numbers<[1], [0], [0], [1], [0, 0, 1, 1], [], []>} : vector<8x64xf32>, vector<64x16xf32>, vector<8x16xf32> -> vector<8x16xf32>
    %c5_112 = arith.constant 5 : index
    %c0_113 = arith.constant 0 : index
    %c0_114 = arith.constant 0 : index
    %106 = vector.load %arg6[%c5_112, %c0_113, %c0_114] : memref<9x16x8xf32, #tpu.memory_space<vmem>>, vector<1x16x8xf32>
    %107 = vector.shape_cast %106 : vector<1x16x8xf32> to vector<16x8xf32>
    %cst_115 = arith.constant dense<0.000000e+00> : vector<16x16xf32>
    %108 = tpu.matmul %107, %105, %cst_115 {dimension_numbers = #tpu.dot_dimension_numbers<[1], [0], [0], [1], [0, 0, 1, 1], [], []>} : vector<16x8xf32>, vector<8x16xf32>, vector<16x16xf32> -> vector<16x16xf32>
    %109 = arith.addf %102, %108 : vector<16x16xf32>
    %c6_116 = arith.constant 6 : index
    %c0_117 = arith.constant 0 : index
    %c0_118 = arith.constant 0 : index
    %110 = vector.load %arg5[%c6_116, %c0_117, %c0_118] : memref<9x64x16xf32, #tpu.memory_space<vmem>>, vector<1x64x16xf32>
    %111 = vector.shape_cast %110 : vector<1x64x16xf32> to vector<64x16xf32>
    %cst_119 = arith.constant dense<0.000000e+00> : vector<8x16xf32>
    %112 = tpu.matmul %68, %111, %cst_119 {dimension_numbers = #tpu.dot_dimension_numbers<[1], [0], [0], [1], [0, 0, 1, 1], [], []>} : vector<8x64xf32>, vector<64x16xf32>, vector<8x16xf32> -> vector<8x16xf32>
    %c6_120 = arith.constant 6 : index
    %c0_121 = arith.constant 0 : index
    %c0_122 = arith.constant 0 : index
    %113 = vector.load %arg6[%c6_120, %c0_121, %c0_122] : memref<9x16x8xf32, #tpu.memory_space<vmem>>, vector<1x16x8xf32>
    %114 = vector.shape_cast %113 : vector<1x16x8xf32> to vector<16x8xf32>
    %cst_123 = arith.constant dense<0.000000e+00> : vector<16x16xf32>
    %115 = tpu.matmul %114, %112, %cst_123 {dimension_numbers = #tpu.dot_dimension_numbers<[1], [0], [0], [1], [0, 0, 1, 1], [], []>} : vector<16x8xf32>, vector<8x16xf32>, vector<16x16xf32> -> vector<16x16xf32>
    %116 = arith.addf %109, %115 : vector<16x16xf32>
    %c7_124 = arith.constant 7 : index
    %c0_125 = arith.constant 0 : index
    %c0_126 = arith.constant 0 : index
    %117 = vector.load %arg5[%c7_124, %c0_125, %c0_126] : memref<9x64x16xf32, #tpu.memory_space<vmem>>, vector<1x64x16xf32>
    %118 = vector.shape_cast %117 : vector<1x64x16xf32> to vector<64x16xf32>
    %cst_127 = arith.constant dense<0.000000e+00> : vector<8x16xf32>
    %119 = tpu.matmul %68, %118, %cst_127 {dimension_numbers = #tpu.dot_dimension_numbers<[1], [0], [0], [1], [0, 0, 1, 1], [], []>} : vector<8x64xf32>, vector<64x16xf32>, vector<8x16xf32> -> vector<8x16xf32>
    %c7_128 = arith.constant 7 : index
    %c0_129 = arith.constant 0 : index
    %c0_130 = arith.constant 0 : index
    %120 = vector.load %arg6[%c7_128, %c0_129, %c0_130] : memref<9x16x8xf32, #tpu.memory_space<vmem>>, vector<1x16x8xf32>
    %121 = vector.shape_cast %120 : vector<1x16x8xf32> to vector<16x8xf32>
    %cst_131 = arith.constant dense<0.000000e+00> : vector<16x16xf32>
    %122 = tpu.matmul %121, %119, %cst_131 {dimension_numbers = #tpu.dot_dimension_numbers<[1], [0], [0], [1], [0, 0, 1, 1], [], []>} : vector<16x8xf32>, vector<8x16xf32>, vector<16x16xf32> -> vector<16x16xf32>
    %123 = arith.addf %116, %122 : vector<16x16xf32>
    %c8_132 = arith.constant 8 : index
    %c0_133 = arith.constant 0 : index
    %c0_134 = arith.constant 0 : index
    %124 = vector.load %arg5[%c8_132, %c0_133, %c0_134] : memref<9x64x16xf32, #tpu.memory_space<vmem>>, vector<1x64x16xf32>
    %125 = vector.shape_cast %124 : vector<1x64x16xf32> to vector<64x16xf32>
    %cst_135 = arith.constant dense<0.000000e+00> : vector<8x16xf32>
    %126 = tpu.matmul %68, %125, %cst_135 {dimension_numbers = #tpu.dot_dimension_numbers<[1], [0], [0], [1], [0, 0, 1, 1], [], []>} : vector<8x64xf32>, vector<64x16xf32>, vector<8x16xf32> -> vector<8x16xf32>
    %c8_136 = arith.constant 8 : index
    %c0_137 = arith.constant 0 : index
    %c0_138 = arith.constant 0 : index
    %127 = vector.load %arg6[%c8_136, %c0_137, %c0_138] : memref<9x16x8xf32, #tpu.memory_space<vmem>>, vector<1x16x8xf32>
    %128 = vector.shape_cast %127 : vector<1x16x8xf32> to vector<16x8xf32>
    %cst_139 = arith.constant dense<0.000000e+00> : vector<16x16xf32>
    %129 = tpu.matmul %128, %126, %cst_139 {dimension_numbers = #tpu.dot_dimension_numbers<[1], [0], [0], [1], [0, 0, 1, 1], [], []>} : vector<16x8xf32>, vector<8x16xf32>, vector<16x16xf32> -> vector<16x16xf32>
    %130 = arith.addf %123, %129 : vector<16x16xf32>
    %c0_140 = arith.constant 0 : index
    %c0_141 = arith.constant 0 : index
    %131 = vector.load %arg7[%c0_140, %c0_141] : memref<16x1xf32, #tpu.memory_space<vmem>>, vector<16x1xf32>
    %132 = vector.broadcast %131 : vector<16x1xf32> to vector<16x16xf32>
    %133 = arith.addf %130, %132 : vector<16x16xf32>
    %cst_142 = arith.constant 0.000000e+00 : f32
    %134 = vector.broadcast %cst_142 : f32 to vector<16x16xf32>
    %135 = arith.maximumf %133, %134 : vector<16x16xf32>
    %c0_143 = arith.constant 0 : index
    %c0_144 = arith.constant 0 : index
    %136 = vector.load %arg8[%c0_143, %c0_144] : memref<3x16xf32, #tpu.memory_space<vmem>>, vector<3x16xf32>
    %cst_145 = arith.constant dense<0.000000e+00> : vector<3x16xf32>
    %137 = tpu.matmul %136, %135, %cst_145 {dimension_numbers = #tpu.dot_dimension_numbers<[1], [0], [0], [1], [0, 0, 1, 1], [], []>} : vector<3x16xf32>, vector<16x16xf32>, vector<3x16xf32> -> vector<3x16xf32>
    %c0_146 = arith.constant 0 : index
    %c0_147 = arith.constant 0 : index
    %138 = vector.load %arg9[%c0_146, %c0_147] : memref<3x1xf32, #tpu.memory_space<vmem>>, vector<3x1xf32>
    %139 = vector.broadcast %138 : vector<3x1xf32> to vector<3x16xf32>
    %140 = arith.addf %137, %139 : vector<3x16xf32>
    %c0_148 = arith.constant 0 : index
    %c0_149 = arith.constant 0 : index
    %141 = vector.load %arg10[%c0_148, %c0_149] : memref<16x256xf32, #tpu.memory_space<vmem>>, vector<16x256xf32>
    %cst_150 = arith.constant dense<0.000000e+00> : vector<3x256xf32>
    %142 = tpu.matmul %140, %141, %cst_150 {dimension_numbers = #tpu.dot_dimension_numbers<[1], [0], [0], [1], [0, 0, 1, 1], [], []>} : vector<3x16xf32>, vector<16x256xf32>, vector<3x256xf32> -> vector<3x256xf32>
    %c0_151 = arith.constant 0 : index
    %c0_152 = arith.constant 0 : index
    %c0_153 = arith.constant 0 : index
    %143 = vector.load %arg11[%c0_151, %c0_152, %c0_153] : memref<1x3x256xf32, #tpu.memory_space<vmem>>, vector<1x3x256xf32>
    %144 = vector.shape_cast %143 : vector<1x3x256xf32> to vector<3x256xf32>
    %145 = vector.shape_cast %142 : vector<3x256xf32> to vector<1x3x256xf32>
    tpu.vector_store %arg11[%c0_151, %c0_152, %c0_153], %145 {strides = array<i32>} : memref<1x3x256xf32, #tpu.memory_space<vmem>>, vector<1x3x256xf32>,
    return
  }
  func.func @transform_0(%arg0: i32) -> (i32, i32, i32) {
    %c0_i32 = arith.constant 0 : i32
    %c0_i32_0 = arith.constant 0 : i32
    %c0_i32_1 = arith.constant 0 : i32
    return %arg0, %c0_i32, %c0_i32_0 : i32, i32, i32
  }
  func.func @transform_1(%arg0: i32) -> (i32, i32, i32) {
    %c0_i32 = arith.constant 0 : i32
    %c0_i32_0 = arith.constant 0 : i32
    %c0_i32_1 = arith.constant 0 : i32
    %c0_i32_2 = arith.constant 0 : i32
    return %c0_i32, %c0_i32_0, %c0_i32_1 : i32, i32, i32
  }
  func.func @transform_2(%arg0: i32) -> (i32, i32, i32) {
    %c0_i32 = arith.constant 0 : i32
    %c0_i32_0 = arith.constant 0 : i32
    %c0_i32_1 = arith.constant 0 : i32
    %c0_i32_2 = arith.constant 0 : i32
    return %c0_i32, %c0_i32_0, %c0_i32_1 : i32, i32, i32
  }
  func.func @transform_3(%arg0: i32) -> (i32, i32) {
    %c0_i32 = arith.constant 0 : i32
    %c0_i32_0 = arith.constant 0 : i32
    %c0_i32_1 = arith.constant 0 : i32
    return %c0_i32, %c0_i32_0 : i32, i32
  }
  func.func @transform_4(%arg0: i32) -> (i32, i32, i32) {
    %c0_i32 = arith.constant 0 : i32
    %c0_i32_0 = arith.constant 0 : i32
    %c0_i32_1 = arith.constant 0 : i32
    %c0_i32_2 = arith.constant 0 : i32
    return %c0_i32, %c0_i32_0, %c0_i32_1 : i32, i32, i32
  }
  func.func @transform_5(%arg0: i32) -> (i32, i32, i32) {
    %c0_i32 = arith.constant 0 : i32
    %c0_i32_0 = arith.constant 0 : i32
    %c0_i32_1 = arith.constant 0 : i32
    %c0_i32_2 = arith.constant 0 : i32
    return %c0_i32, %c0_i32_0, %c0_i32_1 : i32, i32, i32
  }
  func.func @transform_6(%arg0: i32) -> (i32, i32) {
    %c0_i32 = arith.constant 0 : i32
    %c0_i32_0 = arith.constant 0 : i32
    %c0_i32_1 = arith.constant 0 : i32
    return %c0_i32, %c0_i32_0 : i32, i32
  }
  func.func @transform_7(%arg0: i32) -> (i32, i32) {
    %c0_i32 = arith.constant 0 : i32
    %c0_i32_0 = arith.constant 0 : i32
    %c0_i32_1 = arith.constant 0 : i32
    return %c0_i32, %c0_i32_0 : i32, i32
  }
  func.func @transform_8(%arg0: i32) -> (i32, i32) {
    %c0_i32 = arith.constant 0 : i32
    %c0_i32_0 = arith.constant 0 : i32
    %c0_i32_1 = arith.constant 0 : i32
    return %c0_i32, %c0_i32_0 : i32, i32
  }
  func.func @transform_9(%arg0: i32) -> (i32, i32) {
    %c0_i32 = arith.constant 0 : i32
    %c0_i32_0 = arith.constant 0 : i32
    %c0_i32_1 = arith.constant 0 : i32
    return %c0_i32, %c0_i32_0 : i32, i32
  }
  func.func @transform_10(%arg0: i32) -> (i32, i32, i32) {
    %c0_i32 = arith.constant 0 : i32
    %c0_i32_0 = arith.constant 0 : i32
    %c0_i32_1 = arith.constant 0 : i32
    return %arg0, %c0_i32, %c0_i32_0 : i32, i32, i32
  }
}

</mosaic_0001>

<bundles_post_ra>
// kernel: encoder_decoder_forward.1
= control target key start
LH: loop header
LB: loop body
LE: loop exit
PB: predicated region body
PF: predicated region fallthrough
CT: control target
= control target key end

     0   :  { %s5345_s13 = smov 0   ;;  %s6750_s0 = inlined_call_operand.vmem [shape: f32[2,4,256], index: 0, kind: input, shape index: {}]   ;;  %s6751_s1 = inlined_call_operand.vmem [shape: f32[9,256,64], index: 1, kind: input, shape index: {}]   ;;  %s6752_s2 = inlined_call_operand.vmem [shape: f32[9,8,4], index: 2, kind: input, shape index: {}]   ;;  %s6753_s3 = inlined_call_operand.vmem [shape: f32[8,1], index: 3, kind: input, shape index: {}]   ;;  %s6754_s4 = inlined_call_operand.vmem [shape: f32[9,64,16], index: 4, kind: input, shape index: {}]   ;;  %s6755_s5 = inlined_call_operand.vmem [shape: f32[9,16,8], index: 5, kind: input, shape index: {}]   ;;  %s6756_s6 = inlined_call_operand.vmem [shape: f32[16,1], index: 6, kind: input, shape index: {}]   ;;  %s6757_s7 = inlined_call_operand.vmem [shape: f32[3,16], index: 7, kind: input, shape index: {}]   ;;  %s6758_s8 = inlined_call_operand.vmem [shape: f32[3,1], index: 8, kind: input, shape index: {}]   ;;  %s6759_s9 = inlined_call_operand.vmem [shape: f32[16,256], index: 9, kind: input, shape index: {}]   ;;  %s6760_s10 = inlined_call_operand.vmem [shape: f32[2,3,256], index: 10, kind: output, shape index: {}]  }
   0x1 LB: > { %s3727_s14 = sadd.s32 4294967295, %s5284_s13   ;;  %p3731_p0 = scmp.ge.s32.totalorder %s5284_s13, 1  ;;  %s5284_s13 = sphi %s5345_s13, %s20_s13  }
   0x2   : > { %p312_p1 = scmp.lt.s32.totalorder %s5284_s13, 3 }
   0x4   : > { %p313_p2 = pnand %p3731_p0, %p312_p1 }
   0x5   : > { %v377_v0 = vld [vmem:[%s6751_s1 + $0x80] sm:$0xff] (!%p313_p2)  ;;  %v378_v1 = vld [vmem:[%s6751_s1 + $0x88] sm:$0xff] (!%p313_p2)  ;;  %v379_v11 = vld [vmem:[%s6751_s1 + $0x90] sm:$0xff] (!%p313_p2)  ;;  %p5427_p3 = scmp.lt.s32.totalorder (!%p313_p2), %s3727_s14, 1  ;;  %vm5287_vm0 = vmmov (!%p313_p2), 0   ;;  %vm576_vm1 = vcmask (!%p313_p2), 1043456  }
   0x6   : > { %316 = sbr.rel (%p313_p2) target bundleno = 3607 (0xe17), region = 60  ;;  %v3752_v2 = vld [vmem:[%s6751_s1 + $0x180] sm:$0xff] (!%p313_p2)  ;;  %v4843_v3 = vpack.c.bf16 (!%p313_p2), %v378_v1, %v377_v0  ;;  %v3753_v4 = vld [vmem:[%s6751_s1 + $0x188] sm:$0xff] (!%p313_p2)  ;;  %v380_v13 = vld [vmem:[%s6751_s1 + $0x98] sm:$0xff] (!%p313_p2)  ;;  %vm572_vm2 = vcmask (!%p313_p2), 31744   ;;  %vm2016_vm3 = vcmask (!%p313_p2), 523264  }
   0x7   : > { %v361_v5 = vld [vmem:[%s6751_s1] sm:$0xff] (!%p313_p2)  ;;  %v362_v6 = vld [vmem:[%s6751_s1 + $0x8] sm:$0xff] (!%p313_p2)  ;;  %v4875_v7 = vpack.c.bf16 (!%p313_p2), %v3753_v4, %v3752_v2  ;;  %v3754_v14 = vld [vmem:[%s6751_s1 + $0x190] sm:$0xff] (!%p313_p2)  ;;  %v4847_v16 = vpack.c.bf16 (!%p313_p2), %v380_v13, %v379_v11  ;;  %vm2174_vm4 = vcmask (!%p313_p2), 64512   ;;  %vm3515_vm5 = vcmask (!%p313_p2), 130048  }
   0x8   : > { %v4845_v8 = vpack.c.bf16 (!%p313_p2), %v362_v6, %v361_v5  ;;  %v3736_v9 = vld [vmem:[%s6751_s1 + $0x100] sm:$0xff] (!%p313_p2)  ;;  %v3737_v10 = vld [vmem:[%s6751_s1 + $0x108] sm:$0xff] (!%p313_p2)  ;;  %4844 = vmatprep.subr.bf16.mxu0 (!%p313_p2), %v4843_v3  ;;  %v3755_v15 = vld [vmem:[%s6751_s1 + $0x198] sm:$0xff] (!%p313_p2) }
   0x9   : > { %v4877_v12 = vpack.c.bf16 (!%p313_p2), %v3737_v10, %v3736_v9  ;;  %4876 = vmatprep.subr.bf16.mxu1 (!%p313_p2), %v4875_v7  ;;  %v4879_v17 = vpack.c.bf16 (!%p313_p2), %v3755_v15, %v3754_v14  ;;  %v363_v18 = vld [vmem:[%s6751_s1 + $0x10] sm:$0xff] (!%p313_p2)  ;;  %v364_v19 = vld [vmem:[%s6751_s1 + $0x18] sm:$0xff] (!%p313_p2)  ;;  %v381_v23 = vld [vmem:[%s6751_s1 + $0xa0] sm:$0xff] (!%p313_p2) }
   0xa   : > { %4846 = vmatpush3.bf16.msra.mxu0 (!%p313_p2), %v4845_v8  ;;  %v3738_v20 = vld [vmem:[%s6751_s1 + $0x110] sm:$0xff] (!%p313_p2)  ;;  %v4849_v21 = vpack.c.bf16 (!%p313_p2), %v364_v19, %v363_v18  ;;  %v3739_v22 = vld [vmem:[%s6751_s1 + $0x118] sm:$0xff] (!%p313_p2)  ;;  %v382_v24 = vld [vmem:[%s6751_s1 + $0xa8] sm:$0xff] (!%p313_p2) }
   0xb   : > { %4878 = vmatpush3.bf16.msra.mxu1 (!%p313_p2), %v4877_v12  ;;  %4848 = vmatprep.subr.bf16.mxu0 (!%p313_p2), %v4847_v16  ;;  %v4881_v25 = vpack.c.bf16 (!%p313_p2), %v3739_v22, %v3738_v20  ;;  %v4851_v26 = vpack.c.bf16 (!%p313_p2), %v382_v24, %v381_v23  ;;  %v3756_v27 = vld [vmem:[%s6751_s1 + $0x1a0] sm:$0xff] (!%p313_p2)  ;;  %v3757_v28 = vld [vmem:[%s6751_s1 + $0x1a8] sm:$0xff] (!%p313_p2)  ;;  %v383_v35 = vld [vmem:[%s6751_s1 + $0xb0] sm:$0xff] (!%p313_p2) }
   0xc   : > { %4880 = vmatprep.subr.bf16.mxu1 (!%p313_p2), %v4879_v17  ;;  %v365_v29 = vld [vmem:[%s6751_s1 + $0x20] sm:$0xff] (!%p313_p2)  ;;  %v4883_v30 = vpack.c.bf16 (!%p313_p2), %v3757_v28, %v3756_v27  ;;  %v366_v31 = vld [vmem:[%s6751_s1 + $0x28] sm:$0xff] (!%p313_p2)  ;;  %v384_v36 = vld [vmem:[%s6751_s1 + $0xb8] sm:$0xff] (!%p313_p2) }
   0xd   : > { %v3740_v32 = vld [vmem:[%s6751_s1 + $0x120] sm:$0xff]  ;;  %v3741_v33 = vld [vmem:[%s6751_s1 + $0x128] sm:$0xff]  ;;  %v4853_v34 = vpack.c.bf16 %v366_v31, %v365_v29  ;;  %v3758_v37 = vld [vmem:[%s6751_s1 + $0x1b0] sm:$0xff]  ;;  %v4855_v39 = vpack.c.bf16 %v384_v36, %v383_v35  ;;  %s6763_s14 = smov (!%p5427_p3, %s3727_s14), 1 }
   0xe   : > { %4850 = vmatpush3.bf16.msra.mxu0 %v4849_v21  ;;  %v4885_v38 = vpack.c.bf16 %v3741_v33, %v3740_v32  ;;  %v3759_v40 = vld [vmem:[%s6751_s1 + $0x1b8] sm:$0xff]  ;;  %v367_v41 = vld [vmem:[%s6751_s1 + $0x30] sm:$0xff]  ;;  %v385_v46 = vld [vmem:[%s6751_s1 + $0xc0] sm:$0xff]  ;;  %s4129_s15 = sshll.u32 %s6763_s14, 3 }
   0xf   : > { %4882 = vmatpush3.bf16.msra.mxu1 %v4881_v25  ;;  %4852 = vmatprep.subr.bf16.mxu0 %v4851_v26  ;;  %v368_v42 = vld [vmem:[%s6751_s1 + $0x38] sm:$0xff]  ;;  %v4887_v43 = vpack.c.bf16 %v3759_v40, %v3758_v37  ;;  %v3742_v44 = vld [vmem:[%s6751_s1 + $0x130] sm:$0xff]  ;;  %v386_v47 = vld [vmem:[%s6751_s1 + $0xc8] sm:$0xff]  ;;  %s5521_s30 = scalar_lea.vmem %s6750_s0, %s4129_s15  ;;  %s359_s23 = scalar_lea.vmem %s6760_s10, %s4129_s15 }
  0x10   : > { %4884 = vmatprep.subr.bf16.mxu1 %v4883_v30  ;;  %v3743_v45 = vld [vmem:[%s6751_s1 + $0x138] sm:$0xff]  ;;  %v3760_v48 = vld [vmem:[%s6751_s1 + $0x1c0] sm:$0xff]  ;;  %v3761_v49 = vld [vmem:[%s6751_s1 + $0x1c8] sm:$0xff]  ;;  %v4857_v50 = vpack.c.bf16 %v368_v42, %v367_v41  ;;  %v4859_v52 = vpack.c.bf16 %v386_v47, %v385_v46 }
  0x11   : > { %v4889_v51 = vpack.c.bf16 %v3743_v45, %v3742_v44  ;;  %v369_v53 = vld [vmem:[%s6751_s1 + $0x40] sm:$0xff]  ;;  %v370_v54 = vld [vmem:[%s6751_s1 + $0x48] sm:$0xff]  ;;  %v4891_v56 = vpack.c.bf16 %v3761_v49, %v3760_v48  ;;  %v387_v58 = vld [vmem:[%s6751_s1 + $0xd0] sm:$0xff] }
  0x12   : > { %4854 = vmatpush3.bf16.msra.mxu0 %v4853_v34  ;;  %v3744_v55 = vld [vmem:[%s6751_s1 + $0x140] sm:$0xff]  ;;  %v3745_v57 = vld [vmem:[%s6751_s1 + $0x148] sm:$0xff]  ;;  %v388_v59 = vld [vmem:[%s6751_s1 + $0xd8] sm:$0xff]  ;;  %v4861_v62 = vpack.c.bf16 %v370_v54, %v369_v53 }
  0x13   : > { %4886 = vmatpush3.bf16.msra.mxu1 %v4885_v38  ;;  %4856 = vmatprep.subr.bf16.mxu0 %v4855_v39  ;;  %v3762_v60 = vld [vmem:[%s6751_s1 + $0x1d0] sm:$0xff]  ;;  %v3763_v61 = vld [vmem:[%s6751_s1 + $0x1d8] sm:$0xff]  ;;  %v4893_v63 = vpack.c.bf16 %v3745_v57, %v3744_v55  ;;  %v4863_v0 = vpack.c.bf16 %v388_v59, %v387_v58  ;;  %v389_v6 = vld [vmem:[%s6751_s1 + $0xe0] sm:$0xff] }
  0x14   : > { %4888 = vmatprep.subr.bf16.mxu1 %v4887_v43  ;;  %v371_v1 = vld [vmem:[%s6751_s1 + $0x50] sm:$0xff]  ;;  %v372_v2 = vld [vmem:[%s6751_s1 + $0x58] sm:$0xff]  ;;  %v4895_v4 = vpack.c.bf16 %v3763_v61, %v3762_v60  ;;  %v390_v7 = vld [vmem:[%s6751_s1 + $0xe8] sm:$0xff] }
  0x15   : > { %v3746_v3 = vld [vmem:[%s6751_s1 + $0x150] sm:$0xff]  ;;  %v3747_v5 = vld [vmem:[%s6751_s1 + $0x158] sm:$0xff]  ;;  %v3764_v8 = vld [vmem:[%s6751_s1 + $0x1e0] sm:$0xff]  ;;  %v4865_v10 = vpack.c.bf16 %v372_v2, %v371_v1  ;;  %v4867_v13 = vpack.c.bf16 %v390_v7, %v389_v6 }
  0x16   : > { %4858 = vmatpush3.bf16.msra.mxu0 %v4857_v50  ;;  %v3765_v9 = vld [vmem:[%s6751_s1 + $0x1e8] sm:$0xff]  ;;  %v373_v11 = vld [vmem:[%s6751_s1 + $0x60] sm:$0xff]  ;;  %v4897_v12 = vpack.c.bf16 %v3747_v5, %v3746_v3  ;;  %v391_v19 = vld [vmem:[%s6751_s1 + $0xf0] sm:$0xff] }
  0x17   : > { %4890 = vmatpush3.bf16.msra.mxu1 %v4889_v51  ;;  %4860 = vmatprep.subr.bf16.mxu0 %v4859_v52  ;;  %v374_v14 = vld [vmem:[%s6751_s1 + $0x68] sm:$0xff]  ;;  %v3748_v15 = vld [vmem:[%s6751_s1 + $0x160] sm:$0xff]  ;;  %v4899_v17 = vpack.c.bf16 %v3765_v9, %v3764_v8  ;;  %v392_v20 = vld [vmem:[%s6751_s1 + $0xf8] sm:$0xff] }
  0x18   : > { %4892 = vmatprep.subr.bf16.mxu1 %v4891_v56  ;;  %v5539_v16 = vld [vmem:[%s5521_s30] sm:$0xff]  ;;  %v3749_v18 = vld [vmem:[%s6751_s1 + $0x168] sm:$0xff]  ;;  %v3766_v22 = vld [vmem:[%s6751_s1 + $0x1f0] sm:$0xff]  ;;  %v4869_v24 = vpack.c.bf16 %v374_v14, %v373_v11  ;;  %v4871_v26 = vpack.c.bf16 %v392_v20, %v391_v19  ;;  %v5286_v19 = vmov 0.0  }
  0x19   : > { %v5552_v21 = vcombine.high %v5539_v16, %v5539_v16  ;;  %v3767_v23 = vld [vmem:[%s6751_s1 + $0x1f8] sm:$0xff]  ;;  %v4901_v25 = vpack.c.bf16 %v3749_v18, %v3748_v15  ;;  %v375_v27 = vld [vmem:[%s6751_s1 + $0x70] sm:$0xff]  ;;  %v3789_v32 = vld [vmem:[%s6751_s1 + $0x280] sm:$0xff] }
  0x1a   : > { %4862 = vmatpush3.bf16.msra.mxu0 %v4861_v62  ;;  %v376_v28 = vld [vmem:[%s6751_s1 + $0x78] sm:$0xff]  ;;  %v3750_v29 = vld [vmem:[%s6751_s1 + $0x170] sm:$0xff]  ;;  %v4903_v30 = vpack.c.bf16 %v3767_v23, %v3766_v22  ;;  %v3790_v33 = vld [vmem:[%s6751_s1 + $0x288] sm:$0xff] }
  0x1b   : > { %4894 = vmatpush3.bf16.msra.mxu1 %v4893_v63  ;;  %4864 = vmatprep.subr.bf16.mxu0 %v4863_v0  ;;  %v3751_v31 = vld [vmem:[%s6751_s1 + $0x178] sm:$0xff]  ;;  %v4873_v34 = vpack.c.bf16 %v376_v28, %v375_v27  ;;  %v4907_v36 = vpack.c.bf16 %v3790_v33, %v3789_v32  ;;  %v3773_v37 = vld [vmem:[%s6751_s1 + $0x200] sm:$0xff]  ;;  %v3774_v38 = vld [vmem:[%s6751_s1 + $0x208] sm:$0xff] }
  0x1c   : > { %4896 = vmatprep.subr.bf16.mxu1 %v4895_v4  ;;  %460 = vmatprep.mubr.f32.mxu0 %v5552_v21  ;;  %v4905_v35 = vpack.c.bf16 %v3751_v31, %v3750_v29  ;;  %v3791_v39 = vld [vmem:[%s6751_s1 + $0x290] sm:$0xff]  ;;  %v3792_v40 = vld [vmem:[%s6751_s1 + $0x298] sm:$0xff]  ;;  %v4909_v41 = vpack.c.bf16 %v3774_v38, %v3773_v37  ;;  %v3793_v45 = vld [vmem:[%s6751_s1 + $0x2a0] sm:$0xff] }
  0x1d   : > { %564 = vmatprep.mubr.f32.mxu1 %v5552_v21  ;;  %v4911_v42 = vpack.c.bf16 %v3792_v40, %v3791_v39  ;;  %v3775_v43 = vld [vmem:[%s6751_s1 + $0x210] sm:$0xff]  ;;  %v3776_v44 = vld [vmem:[%s6751_s1 + $0x218] sm:$0xff]  ;;  %v3794_v46 = vld [vmem:[%s6751_s1 + $0x2a8] sm:$0xff] }
  0x1e   : > { %4866 = vmatpush3.bf16.msra.mxu0 %v4865_v10  ;;  %v4913_v47 = vpack.c.bf16 %v3776_v44, %v3775_v43  ;;  %v4915_v48 = vpack.c.bf16 %v3794_v46, %v3793_v45  ;;  %v3777_v49 = vld [vmem:[%s6751_s1 + $0x220] sm:$0xff]  ;;  %v3778_v50 = vld [vmem:[%s6751_s1 + $0x228] sm:$0xff]  ;;  %v3795_v51 = vld [vmem:[%s6751_s1 + $0x2b0] sm:$0xff] }
  0x1f   : > { %4898 = vmatpush3.bf16.msra.mxu1 %v4897_v12  ;;  %4868 = vmatprep.subr.bf16.mxu0 %v4867_v13  ;;  %v3796_v52 = vld [vmem:[%s6751_s1 + $0x2b8] sm:$0xff]  ;;  %v4917_v53 = vpack.c.bf16 %v3778_v50, %v3777_v49  ;;  %v3779_v55 = vld [vmem:[%s6751_s1 + $0x230] sm:$0xff]  ;;  %v3797_v57 = vld [vmem:[%s6751_s1 + $0x2c0] sm:$0xff] }
  0x20   : > { %4900 = vmatprep.subr.bf16.mxu1 %v4899_v17  ;;  %v4919_v54 = vpack.c.bf16 %v3796_v52, %v3795_v51  ;;  %v3780_v56 = vld [vmem:[%s6751_s1 + $0x238] sm:$0xff]  ;;  %v3798_v58 = vld [vmem:[%s6751_s1 + $0x2c8] sm:$0xff]  ;;  %v3781_v61 = vld [vmem:[%s6751_s1 + $0x240] sm:$0xff] }
  0x21   : > { %v4921_v59 = vpack.c.bf16 %v3780_v56, %v3779_v55  ;;  %v4923_v60 = vpack.c.bf16 %v3798_v58, %v3797_v57  ;;  %v3782_v62 = vld [vmem:[%s6751_s1 + $0x248] sm:$0xff]  ;;  %v3799_v63 = vld [vmem:[%s6751_s1 + $0x2d0] sm:$0xff]  ;;  %v3800_v0 = vld [vmem:[%s6751_s1 + $0x2d8] sm:$0xff] }
  0x22   : > { %4870 = vmatpush3.bf16.msra.mxu0 %v4869_v24  ;;  %v4925_v1 = vpack.c.bf16 %v3782_v62, %v3781_v61  ;;  %v4927_v2 = vpack.c.bf16 %v3800_v0, %v3799_v63  ;;  %v3783_v3 = vld [vmem:[%s6751_s1 + $0x250] sm:$0xff]  ;;  %v3784_v4 = vld [vmem:[%s6751_s1 + $0x258] sm:$0xff]  ;;  %v3801_v5 = vld [vmem:[%s6751_s1 + $0x2e0] sm:$0xff] }
  0x23   : > { %4902 = vmatpush3.bf16.msra.mxu1 %v4901_v25  ;;  %4872 = vmatprep.subr.bf16.mxu0 %v4871_v26  ;;  %v3802_v6 = vld [vmem:[%s6751_s1 + $0x2e8] sm:$0xff]  ;;  %v4929_v7 = vpack.c.bf16 %v3784_v4, %v3783_v3  ;;  %v3785_v9 = vld [vmem:[%s6751_s1 + $0x260] sm:$0xff]  ;;  %v3803_v11 = vld [vmem:[%s6751_s1 + $0x2f0] sm:$0xff] }
  0x24   : > { %4904 = vmatprep.subr.bf16.mxu1 %v4903_v30  ;;  %v4931_v8 = vpack.c.bf16 %v3802_v6, %v3801_v5  ;;  %v3786_v10 = vld [vmem:[%s6751_s1 + $0x268] sm:$0xff]  ;;  %v3804_v12 = vld [vmem:[%s6751_s1 + $0x2f8] sm:$0xff]  ;;  %v3787_v15 = vld [vmem:[%s6751_s1 + $0x270] sm:$0xff] }
  0x25   : > { %v4933_v13 = vpack.c.bf16 %v3786_v10, %v3785_v9  ;;  %v4935_v14 = vpack.c.bf16 %v3804_v12, %v3803_v11  ;;  %v3788_v17 = vld [vmem:[%s6751_s1 + $0x278] sm:$0xff]  ;;  %v3768_v27 = vld [vmem:[%s6752_s2 + $0x8] sm:$0xff]  ;;  %v466_v28 = vld [vmem:[%s6752_s2] sm:$0xff] }
  0x26   : > { %4874 = vmatpush3.bf16.msra.mxu0 %v4873_v34  ;;  %v4937_v18 = vpack.c.bf16 %v3788_v17, %v3787_v15  ;;  %v3824_v29 = vld [vmem:[%s6751_s1 + $0x380] sm:$0xff]  ;;  %v3825_v30 = vld [vmem:[%s6751_s1 + $0x388] sm:$0xff]  ;;  %v3826_v34 = vld [vmem:[%s6751_s1 + $0x390] sm:$0xff] }
  0x27   : > { %4906 = vmatpush3.bf16.msra.mxu1 %v4905_v35  ;;  %4908 = vmatprep.subr.bf16.mxu0 %v4907_v36  ;;  %v3808_v31 = vld [vmem:[%s6751_s1 + $0x300] sm:$0xff]  ;;  %v3809_v32 = vld [vmem:[%s6751_s1 + $0x308] sm:$0xff]  ;;  %v3827_v35 = vld [vmem:[%s6751_s1 + $0x398] sm:$0xff]  ;;  %v4939_v37 = vpack.c.bf16 %v3825_v30, %v3824_v29 }
  0x28   : > { %4575 = vmatprep.subr.mxu1 %v5286_v19  ;;  %v3805_v39 = vld [vmem:[%s6752_s2 + $0x10] sm:$0xff]  ;;  %v4941_v40 = vpack.c.bf16 %v3809_v32, %v3808_v31  ;;  %v3811_v43 = vld [vmem:[%s6751_s1 + $0x318] sm:$0xff]  ;;  %v3828_v44 = vld [vmem:[%s6751_s1 + $0x3a0] sm:$0xff] }
  0x29   : > { %461 = vmatmul.mubr.f32.vlgmr.msra.gmra.mrb[0].mxu0 %v5539_v16  ;;  %v3829_v45 = vld [vmem:[%s6751_s1 + $0x3a8] sm:$0xff]  ;;  %v3830_v50 = vld [vmem:[%s6751_s1 + $0x3b0] sm:$0xff]  ;;  %v3831_v51 = vld [vmem:[%s6751_s1 + $0x3b8] sm:$0xff] }
  0x2a   : > { %565 = vmatmul.mubr.f32.vlgmr.msra.gmra.mrb[0].mxu1 %v5539_v16  ;;  %4910 = vmatpush3.bf16.msra.mxu0 %v4909_v41  ;;  %v4943_v41 = vpack.c.bf16 %v3827_v35, %v3826_v34  ;;  %v3813_v49 = vld [vmem:[%s6751_s1 + $0x328] sm:$0xff]  ;;  %v3815_v55 = vld [vmem:[%s6751_s1 + $0x338] sm:$0xff]  ;;  %v3832_v56 = vld [vmem:[%s6751_s1 + $0x3c0] sm:$0xff] }
  0x2b   : > { %4912 = vmatprep.subr.bf16.mxu0 %v4911_v42  ;;  %823 = vmatprep.mubr.f32.mxu0 %v5552_v21  ;;  %v3810_v42 = vld [vmem:[%s6751_s1 + $0x310] sm:$0xff]  ;;  %v3833_v57 = vld [vmem:[%s6751_s1 + $0x3c8] sm:$0xff]  ;;  %v3835_v63 = vld [vmem:[%s6751_s1 + $0x3d8] sm:$0xff] }
  0x2c   : > { %4577 = vmatprep.mubr.msk.f32.mxu1 %vm5287_vm0, %v5286_v19  ;;  %v4945_v46 = vpack.c.bf16 %v3811_v43, %v3810_v42  ;;  %v3817_v61 = vld [vmem:[%s6751_s1 + $0x348] sm:$0xff]  ;;  %v3834_v62 = vld [vmem:[%s6751_s1 + $0x3d0] sm:$0xff]  ;;  %v3819_v3 = vld [vmem:[%s6751_s1 + $0x358] sm:$0xff] }
  0x2d   : > { %v3836_v4 = vld [vmem:[%s6751_s1 + $0x3e0] sm:$0xff]  ;;  %v3837_v5 = vld [vmem:[%s6751_s1 + $0x3e8] sm:$0xff]  ;;  %v3838_v10 = vld [vmem:[%s6751_s1 + $0x3f0] sm:$0xff] }
  0x2e   : > { %4914 = vmatpush3.bf16.msra.mxu0 %v4913_v47  ;;  %v4947_v47 = vpack.c.bf16 %v3829_v45, %v3828_v44  ;;  %v3821_v9 = vld [vmem:[%s6751_s1 + $0x368] sm:$0xff]  ;;  %v3839_v11 = vld [vmem:[%s6751_s1 + $0x3f8] sm:$0xff]  ;;  %v3843_v30 = vld [vmem:[%s6751_s1 + $0x400] sm:$0xff] }
  0x2f   : > { %4916 = vmatprep.subr.bf16.mxu0 %v4915_v48  ;;  %v3812_v48 = vld [vmem:[%s6751_s1 + $0x320] sm:$0xff]  ;;  %v3823_v15 = vld [vmem:[%s6751_s1 + $0x378] sm:$0xff]  ;;  %v3860_v29 = vld [vmem:[%s6751_s1 + $0x488] sm:$0xff] }
  0x30   : > { %v4949_v52 = vpack.c.bf16 %v3813_v49, %v3812_v48  ;;  %v3844_v31 = vld [vmem:[%s6751_s1 + $0x408] sm:$0xff]  ;;  %v3862_v34 = vld [vmem:[%s6751_s1 + $0x498] sm:$0xff]  ;;  %v3863_v43 = vld [vmem:[%s6751_s1 + $0x4a0] sm:$0xff] }
  0x31   : > { %v3846_v42 = vld [vmem:[%s6751_s1 + $0x418] sm:$0xff]  ;;  %v3864_v44 = vld [vmem:[%s6751_s1 + $0x4a8] sm:$0xff]  ;;  %v3865_v49 = vld [vmem:[%s6751_s1 + $0x4b0] sm:$0xff] }
  0x32   : > { %4918 = vmatpush3.bf16.msra.mxu0 %v4917_v53  ;;  %v4951_v53 = vpack.c.bf16 %v3831_v51, %v3830_v50  ;;  %v3848_v48 = vld [vmem:[%s6751_s1 + $0x428] sm:$0xff]  ;;  %v3866_v50 = vld [vmem:[%s6751_s1 + $0x4b8] sm:$0xff] }
  0x33   : > { %4920 = vmatprep.subr.bf16.mxu0 %v4919_v54  ;;  %v3814_v54 = vld [vmem:[%s6751_s1 + $0x330] sm:$0xff] }
  0x34   : > { %v4953_v58 = vpack.c.bf16 %v3815_v55, %v3814_v54  ;;  %v3850_v54 = vld [vmem:[%s6751_s1 + $0x438] sm:$0xff]  ;;  %v3867_v55 = vld [vmem:[%s6751_s1 + $0x4c0] sm:$0xff] }
  0x36   : > { %4922 = vmatpush3.bf16.msra.mxu0 %v4921_v59  ;;  %v4955_v59 = vpack.c.bf16 %v3833_v57, %v3832_v56  ;;  %v3868_v56 = vld [vmem:[%s6751_s1 + $0x4c8] sm:$0xff] }
  0x37   : > { %4924 = vmatprep.subr.bf16.mxu0 %v4923_v60  ;;  %v3816_v60 = vld [vmem:[%s6751_s1 + $0x340] sm:$0xff] }
  0x38   : > { %v4957_v0 = vpack.c.bf16 %v3817_v61, %v3816_v60  ;;  %v3852_v60 = vld [vmem:[%s6751_s1 + $0x448] sm:$0xff]  ;;  %v3869_v61 = vld [vmem:[%s6751_s1 + $0x4d0] sm:$0xff] }
  0x3a   : > { %4926 = vmatpush3.bf16.msra.mxu0 %v4925_v1  ;;  %v4959_v1 = vpack.c.bf16 %v3835_v63, %v3834_v62  ;;  %v3870_v62 = vld [vmem:[%s6751_s1 + $0x4d8] sm:$0xff] }
  0x3b   : > { %4928 = vmatprep.subr.bf16.mxu0 %v4927_v2  ;;  %v3818_v2 = vld [vmem:[%s6751_s1 + $0x350] sm:$0xff] }
  0x3c   : > { %v4961_v6 = vpack.c.bf16 %v3819_v3, %v3818_v2  ;;  %v3854_v2 = vld [vmem:[%s6751_s1 + $0x458] sm:$0xff]  ;;  %v3871_v3 = vld [vmem:[%s6751_s1 + $0x4e0] sm:$0xff] }
  0x3e   : > { %4930 = vmatpush3.bf16.msra.mxu0 %v4929_v7  ;;  %v4963_v7 = vpack.c.bf16 %v3837_v5, %v3836_v4  ;;  %v3872_v4 = vld [vmem:[%s6751_s1 + $0x4e8] sm:$0xff] }
  0x3f   : > { %4932 = vmatprep.subr.bf16.mxu0 %v4931_v8  ;;  %v3820_v8 = vld [vmem:[%s6751_s1 + $0x360] sm:$0xff] }
  0x40   : > { %v4965_v12 = vpack.c.bf16 %v3821_v9, %v3820_v8  ;;  %v3856_v8 = vld [vmem:[%s6751_s1 + $0x468] sm:$0xff]  ;;  %v3873_v9 = vld [vmem:[%s6751_s1 + $0x4f0] sm:$0xff] }
  0x42   : > { %4934 = vmatpush3.bf16.msra.mxu0 %v4933_v13  ;;  %v4967_v13 = vpack.c.bf16 %v3839_v11, %v3838_v10  ;;  %v3874_v10 = vld [vmem:[%s6751_s1 + $0x4f8] sm:$0xff] }
  0x43   : > { %4936 = vmatprep.subr.bf16.mxu0 %v4935_v14  ;;  %v3822_v14 = vld [vmem:[%s6751_s1 + $0x370] sm:$0xff] }
  0x44   : > { %v4969_v17 = vpack.c.bf16 %v3823_v15, %v3822_v14  ;;  %v3858_v14 = vld [vmem:[%s6751_s1 + $0x478] sm:$0xff] }
  0x46   : > { %4938 = vmatpush3.bf16.msra.mxu0 %v4937_v18 }
  0x47   : > { %4590 = vmatprep.subr.mxu0 %v5286_v19 }
  0x49   : > { %824 = vmatmul.mubr.f32.vlgmr.msra.gmra.mrb[2].mxu0 %v5539_v16 }
  0x4a   : > { %4592 = vmatprep.mubr.msk.f32.mxu0 %vm5287_vm0, %v5286_v19 }
  0xfc   : > { %v4163_v20 = vpop.f32.mrb[0].mxu0 }
  0xfd   : > { %v4198_v22 = vpop.f32.mrb[0].mxu1  ;;  %v4164_v23 = vpop.f32.mrb[1].mxu0 }
  0xfe   : > { %v4165_v24 = vadd.f32 %v4164_v23, %v4163_v20  ;;  %v4199_v25 = vpop.f32.mrb[1].mxu1 }
  0xff   : > { %v4200_v26 = vadd.f32 %v4199_v25, %v4198_v22 }
 0x101   : > { %4576 = vmatpush3.msk.msra.mxu1 %vm576_vm1, %v4200_v26 }
 0x102   : > { %4580 = vmatprep.subr.mxu1 %v5286_v19  ;;  %4578 = vmatmul.mubr.msk.f32.vlgmr.msra.gmra.mrb[2].mxu1 %vm572_vm2, %v3768_v27 }
 0x103   : > { %4581 = vmatpush3.msk.msra.mxu1 %vm576_vm1, %v4165_v24  ;;  %4582 = vmatprep.mubr.msk.f32.mxu1 %vm5287_vm0, %v5286_v19 }
 0x104   : > { %4585 = vmatprep.subr.mxu1 %v5286_v19 }
 0x106   : > { %4583 = vmatmul.mubr.msk.f32.vlgmr.msra.gmra.mrb[4].mxu1 %vm572_vm2, %v466_v28  ;;  %v3859_v28 = vld [vmem:[%s6751_s1 + $0x480] sm:$0xff] }
 0x107   : > { %4587 = vmatprep.mubr.msk.f32.mxu1 %vm5287_vm0, %v5286_v19 }
 0x11c   : > { %v4237_v33 = vpop.f32.mrb[2].mxu0 }
 0x11d   : > { %v4238_v36 = vpop.f32.mrb[3].mxu0 }
 0x11e   : > { %v4239_v38 = vadd.f32 %v4238_v36, %v4237_v33  ;;  %v3861_v33 = vld [vmem:[%s6751_s1 + $0x490] sm:$0xff]  ;;  %v4971_v36 = vpack.c.bf16 %v3860_v29, %v3859_v28  ;;  %v3897_v28 = vld [vmem:[%s6751_s1 + $0x598] sm:$0xff] }
 0x120   : > { %4586 = vmatpush3.msk.msra.mxu1 %vm576_vm1, %v4239_v38  ;;  %v3840_v38 = vld [vmem:[%s6752_s2 + $0x18] sm:$0xff] }
 0x121   : > { %4588 = vmatmul.mubr.msk.f32.vlgmr.msra.gmra.mrb[6].mxu1 %vm572_vm2, %v3805_v39  ;;  %4940 = vmatprep.subr.bf16.mxu1 %v4939_v37  ;;  %v4973_v39 = vpack.c.bf16 %v3844_v31, %v3843_v30 }
 0x122   : > { %4942 = vmatpush3.bf16.msra.mxu1 %v4941_v40  ;;  %1005 = vmatprep.mubr.f32.mxu1 %v5552_v21  ;;  %v4975_v40 = vpack.c.bf16 %v3862_v34, %v3861_v33 }
 0x123   : > { %4944 = vmatprep.subr.bf16.mxu1 %v4943_v41  ;;  %v3845_v41 = vld [vmem:[%s6751_s1 + $0x410] sm:$0xff] }
 0x124   : > { %v4977_v45 = vpack.c.bf16 %v3846_v42, %v3845_v41  ;;  %v3882_v41 = vld [vmem:[%s6751_s1 + $0x520] sm:$0xff]  ;;  %v3883_v42 = vld [vmem:[%s6751_s1 + $0x528] sm:$0xff] }
 0x126   : > { %4946 = vmatpush3.bf16.msra.mxu1 %v4945_v46  ;;  %v4979_v46 = vpack.c.bf16 %v3864_v44, %v3863_v43  ;;  %v3900_v43 = vld [vmem:[%s6751_s1 + $0x5b0] sm:$0xff]  ;;  %v3901_v44 = vld [vmem:[%s6751_s1 + $0x5b8] sm:$0xff] }
 0x127   : > { %4948 = vmatprep.subr.bf16.mxu1 %v4947_v47  ;;  %v3847_v47 = vld [vmem:[%s6751_s1 + $0x420] sm:$0xff] }
 0x128   : > { %v4981_v51 = vpack.c.bf16 %v3848_v48, %v3847_v47  ;;  %v3884_v47 = vld [vmem:[%s6751_s1 + $0x530] sm:$0xff]  ;;  %v3885_v48 = vld [vmem:[%s6751_s1 + $0x538] sm:$0xff] }
 0x12a   : > { %4950 = vmatpush3.bf16.msra.mxu1 %v4949_v52  ;;  %v4983_v52 = vpack.c.bf16 %v3866_v50, %v3865_v49  ;;  %v3902_v49 = vld [vmem:[%s6751_s1 + $0x5c0] sm:$0xff]  ;;  %v3903_v50 = vld [vmem:[%s6751_s1 + $0x5c8] sm:$0xff] }
 0x12b   : > { %4952 = vmatprep.subr.bf16.mxu1 %v4951_v53  ;;  %v3849_v53 = vld [vmem:[%s6751_s1 + $0x430] sm:$0xff] }
 0x12c   : > { %v4985_v57 = vpack.c.bf16 %v3850_v54, %v3849_v53  ;;  %v3886_v53 = vld [vmem:[%s6751_s1 + $0x540] sm:$0xff]  ;;  %v3887_v54 = vld [vmem:[%s6751_s1 + $0x548] sm:$0xff] }
 0x12e   : > { %4954 = vmatpush3.bf16.msra.mxu1 %v4953_v58  ;;  %v4987_v58 = vpack.c.bf16 %v3868_v56, %v3867_v55  ;;  %v3904_v55 = vld [vmem:[%s6751_s1 + $0x5d0] sm:$0xff]  ;;  %v3905_v56 = vld [vmem:[%s6751_s1 + $0x5d8] sm:$0xff] }
 0x12f   : > { %4956 = vmatprep.subr.bf16.mxu1 %v4955_v59  ;;  %v3851_v59 = vld [vmem:[%s6751_s1 + $0x440] sm:$0xff] }
 0x130   : > { %v4989_v63 = vpack.c.bf16 %v3852_v60, %v3851_v59  ;;  %v3888_v59 = vld [vmem:[%s6751_s1 + $0x550] sm:$0xff]  ;;  %v3889_v60 = vld [vmem:[%s6751_s1 + $0x558] sm:$0xff] }
 0x132   : > { %4958 = vmatpush3.bf16.msra.mxu1 %v4957_v0  ;;  %v4991_v0 = vpack.c.bf16 %v3870_v62, %v3869_v61  ;;  %v3906_v61 = vld [vmem:[%s6751_s1 + $0x5e0] sm:$0xff]  ;;  %v3907_v62 = vld [vmem:[%s6751_s1 + $0x5e8] sm:$0xff] }
 0x133   : > { %4960 = vmatprep.subr.bf16.mxu1 %v4959_v1  ;;  %v3853_v1 = vld [vmem:[%s6751_s1 + $0x450] sm:$0xff] }
 0x134   : > { %v4993_v5 = vpack.c.bf16 %v3854_v2, %v3853_v1  ;;  %v3890_v1 = vld [vmem:[%s6751_s1 + $0x560] sm:$0xff]  ;;  %v3891_v2 = vld [vmem:[%s6751_s1 + $0x568] sm:$0xff] }
 0x136   : > { %4962 = vmatpush3.bf16.msra.mxu1 %v4961_v6  ;;  %v4995_v6 = vpack.c.bf16 %v3872_v4, %v3871_v3  ;;  %v3908_v3 = vld [vmem:[%s6751_s1 + $0x5f0] sm:$0xff]  ;;  %v3909_v4 = vld [vmem:[%s6751_s1 + $0x5f8] sm:$0xff] }
 0x137   : > { %4964 = vmatprep.subr.bf16.mxu1 %v4963_v7  ;;  %v3855_v7 = vld [vmem:[%s6751_s1 + $0x460] sm:$0xff] }
 0x138   : > { %v4997_v11 = vpack.c.bf16 %v3856_v8, %v3855_v7  ;;  %v3892_v7 = vld [vmem:[%s6751_s1 + $0x570] sm:$0xff]  ;;  %v3893_v8 = vld [vmem:[%s6751_s1 + $0x578] sm:$0xff] }
 0x13a   : > { %4966 = vmatpush3.bf16.msra.mxu1 %v4965_v12  ;;  %v4999_v12 = vpack.c.bf16 %v3874_v10, %v3873_v9  ;;  %v5033_v9 = vpack.c.bf16 %v3893_v8, %v3892_v7  ;;  %v3964_v7 = vld [vmem:[%s6751_s1 + $0x780] sm:$0xff]  ;;  %v3965_v8 = vld [vmem:[%s6751_s1 + $0x788] sm:$0xff] }
 0x13b   : > { %4968 = vmatprep.subr.bf16.mxu1 %v4967_v13  ;;  %v3857_v13 = vld [vmem:[%s6751_s1 + $0x470] sm:$0xff] }
 0x13c   : > { %v5001_v15 = vpack.c.bf16 %v3858_v14, %v3857_v13  ;;  %v3929_v13 = vld [vmem:[%s6751_s1 + $0x680] sm:$0xff]  ;;  %v3930_v14 = vld [vmem:[%s6751_s1 + $0x688] sm:$0xff] }
 0x13e   : > { %4970 = vmatpush3.bf16.msra.mxu1 %v4969_v17 }
 0x13f   : > { %4595 = vmatprep.subr.mxu1 %v5286_v19 }
 0x141   : > { %1006 = vmatmul.mubr.f32.vlgmr.msra.gmra.mrb[8].mxu1 %v5539_v16 }
 0x142   : > { %4597 = vmatprep.mubr.msk.f32.mxu1 %vm5287_vm0, %v5286_v19 }
 0x1d5   : > { %v646_v18 = vpop.f32.mrb[2].mxu1 }
 0x1d6   : > { %v4579_v20 = vpop.f32.mrb[3].mxu1 }
 0x1d9   : > { %v722_v22 = vpop.f32.mrb[4].mxu1 }
 0x1da   : > { %v723_v23 = vadd.f32 %v722_v22, %v646_v18  ;;  %v4584_v24 = vpop.f32.mrb[5].mxu1  ;;  %v3894_v22 = vld [vmem:[%s6751_s1 + $0x580] sm:$0xff] }
 0x1db   : > { %v3878_v24 = vld [vmem:[%s6751_s1 + $0x500] sm:$0xff] }
 0x1f4   : > { %v903_v25 = vpop.f32.mrb[6].mxu1 }
 0x1f5   : > { %v5802_v26 = vadd.f32 %v903_v25, %v723_v23  ;;  %v4589_v27 = vpop.f32.mrb[7].mxu1  ;;  %v3895_v23 = vld [vmem:[%s6751_s1 + $0x588] sm:$0xff] }
 0x1f6   : > { %v3879_v25 = vld [vmem:[%s6751_s1 + $0x508] sm:$0xff]  ;;  %v5003_v30 = vpack.c.bf16 %v3895_v23, %v3894_v22  ;;  %v3932_v22 = vld [vmem:[%s6751_s1 + $0x698] sm:$0xff] }
 0x1f7   : > { %v5005_v33 = vpack.c.bf16 %v3879_v25, %v3878_v24  ;;  %v5035_v24 = vpack.c.bf16 %v3930_v14, %v3929_v13  ;;  %v3967_v13 = vld [vmem:[%s6751_s1 + $0x798] sm:$0xff] }
 0x214   : > { %v4274_v32 = vpop.f32.mrb[8].mxu1 }
 0x215   : > { %v4275_v35 = vpop.f32.mrb[9].mxu1 }
 0x216   : > { %v4276_v37 = vadd.f32 %v4275_v35, %v4274_v32  ;;  %v3875_v32 = vld [vmem:[%s6752_s2 + $0x20] sm:$0xff]  ;;  %v3880_v35 = vld [vmem:[%s6751_s1 + $0x510] sm:$0xff] }
 0x218   : > { %4591 = vmatpush3.msk.msra.mxu0 %vm576_vm1, %v4276_v37  ;;  %v3898_v37 = vld [vmem:[%s6751_s1 + $0x5a0] sm:$0xff] }
 0x219   : > { %4593 = vmatmul.mubr.msk.f32.vlgmr.msra.gmra.mrb[4].mxu0 %vm572_vm2, %v3840_v38  ;;  %4972 = vmatprep.subr.bf16.mxu0 %v4971_v36  ;;  %v3881_v36 = vld [vmem:[%s6751_s1 + $0x518] sm:$0xff]  ;;  %v3899_v38 = vld [vmem:[%s6751_s1 + $0x5a8] sm:$0xff] }
 0x21a   : > { %4974 = vmatpush3.bf16.msra.mxu0 %v4973_v39  ;;  %1187 = vmatprep.mubr.f32.mxu0 %v5552_v21  ;;  %v5009_v39 = vpack.c.bf16 %v3881_v36, %v3880_v35  ;;  %v3917_v35 = vld [vmem:[%s6751_s1 + $0x620] sm:$0xff]  ;;  %v3918_v36 = vld [vmem:[%s6751_s1 + $0x628] sm:$0xff] }
 0x21b   : > { %4976 = vmatprep.subr.bf16.mxu0 %v4975_v40  ;;  %v5011_v40 = vpack.c.bf16 %v3899_v38, %v3898_v37  ;;  %v3935_v37 = vld [vmem:[%s6751_s1 + $0x6b0] sm:$0xff]  ;;  %v3936_v38 = vld [vmem:[%s6751_s1 + $0x6b8] sm:$0xff] }
 0x21e   : > { %4978 = vmatpush3.bf16.msra.mxu0 %v4977_v45  ;;  %v5013_v45 = vpack.c.bf16 %v3883_v42, %v3882_v41  ;;  %v3919_v41 = vld [vmem:[%s6751_s1 + $0x630] sm:$0xff]  ;;  %v3920_v42 = vld [vmem:[%s6751_s1 + $0x638] sm:$0xff] }
 0x21f   : > { %4980 = vmatprep.subr.bf16.mxu0 %v4979_v46  ;;  %v5015_v46 = vpack.c.bf16 %v3901_v44, %v3900_v43  ;;  %v3937_v43 = vld [vmem:[%s6751_s1 + $0x6c0] sm:$0xff]  ;;  %v3938_v44 = vld [vmem:[%s6751_s1 + $0x6c8] sm:$0xff] }
 0x222   : > { %4982 = vmatpush3.bf16.msra.mxu0 %v4981_v51  ;;  %v5017_v51 = vpack.c.bf16 %v3885_v48, %v3884_v47  ;;  %v3921_v47 = vld [vmem:[%s6751_s1 + $0x640] sm:$0xff]  ;;  %v3922_v48 = vld [vmem:[%s6751_s1 + $0x648] sm:$0xff] }
 0x223   : > { %4984 = vmatprep.subr.bf16.mxu0 %v4983_v52  ;;  %v5019_v52 = vpack.c.bf16 %v3903_v50, %v3902_v49  ;;  %v3939_v49 = vld [vmem:[%s6751_s1 + $0x6d0] sm:$0xff]  ;;  %v3940_v50 = vld [vmem:[%s6751_s1 + $0x6d8] sm:$0xff] }
 0x226   : > { %4986 = vmatpush3.bf16.msra.mxu0 %v4985_v57  ;;  %v5021_v57 = vpack.c.bf16 %v3887_v54, %v3886_v53  ;;  %v3923_v53 = vld [vmem:[%s6751_s1 + $0x650] sm:$0xff]  ;;  %v3924_v54 = vld [vmem:[%s6751_s1 + $0x658] sm:$0xff] }
 0x227   : > { %4988 = vmatprep.subr.bf16.mxu0 %v4987_v58  ;;  %v5023_v58 = vpack.c.bf16 %v3905_v56, %v3904_v55  ;;  %v3941_v55 = vld [vmem:[%s6751_s1 + $0x6e0] sm:$0xff]  ;;  %v3942_v56 = vld [vmem:[%s6751_s1 + $0x6e8] sm:$0xff] }
 0x22a   : > { %4990 = vmatpush3.bf16.msra.mxu0 %v4989_v63  ;;  %v5025_v63 = vpack.c.bf16 %v3889_v60, %v3888_v59  ;;  %v3925_v59 = vld [vmem:[%s6751_s1 + $0x660] sm:$0xff]  ;;  %v3926_v60 = vld [vmem:[%s6751_s1 + $0x668] sm:$0xff] }
 0x22b   : > { %4992 = vmatprep.subr.bf16.mxu0 %v4991_v0  ;;  %v5027_v0 = vpack.c.bf16 %v3907_v62, %v3906_v61  ;;  %v3943_v61 = vld [vmem:[%s6751_s1 + $0x6f0] sm:$0xff]  ;;  %v3944_v62 = vld [vmem:[%s6751_s1 + $0x6f8] sm:$0xff] }
 0x22e   : > { %4994 = vmatpush3.bf16.msra.mxu0 %v4993_v5  ;;  %v5029_v5 = vpack.c.bf16 %v3891_v2, %v3890_v1  ;;  %v3927_v1 = vld [vmem:[%s6751_s1 + $0x670] sm:$0xff]  ;;  %v3928_v2 = vld [vmem:[%s6751_s1 + $0x678] sm:$0xff] }
 0x22f   : > { %4996 = vmatprep.subr.bf16.mxu0 %v4995_v6  ;;  %v5031_v6 = vpack.c.bf16 %v3909_v4, %v3908_v3  ;;  %v5065_v3 = vpack.c.bf16 %v3928_v2, %v3927_v1  ;;  %v3999_v1 = vld [vmem:[%s6751_s1 + $0x880] sm:$0xff]  ;;  %v4000_v2 = vld [vmem:[%s6751_s1 + $0x888] sm:$0xff] }
 0x232   : > { %4998 = vmatpush3.bf16.msra.mxu0 %v4997_v11 }
 0x233   : > { %5000 = vmatprep.subr.bf16.mxu0 %v4999_v12 }
 0x236   : > { %5002 = vmatpush3.bf16.msra.mxu0 %v5001_v15  ;;  %v3913_v15 = vld [vmem:[%s6751_s1 + $0x600] sm:$0xff] }
 0x237   : > { %4600 = vmatprep.subr.mxu0 %v5286_v19 }
 0x239   : > { %1188 = vmatmul.mubr.f32.vlgmr.msra.gmra.mrb[6].mxu0 %v5539_v16 }
 0x23a   : > { %4602 = vmatprep.mubr.msk.f32.mxu0 %vm5287_vm0, %v5286_v19 }
 0x2ec   : > { %v1085_v17 = vpop.f32.mrb[4].mxu0 }
 0x2ed   : > { %v5911_v18 = vadd.f32 %v1085_v17, %v5802_v26  ;;  %v4594_v20 = vpop.f32.mrb[5].mxu0  ;;  %v3896_v26 = vld [vmem:[%s6751_s1 + $0x590] sm:$0xff]  ;;  %v3914_v17 = vld [vmem:[%s6751_s1 + $0x608] sm:$0xff] }
 0x2ee   : > { %v5007_v34 = vpack.c.bf16 %v3897_v28, %v3896_v26  ;;  %v5037_v26 = vpack.c.bf16 %v3914_v17, %v3913_v15  ;;  %v5067_v15 = vpack.c.bf16 %v3965_v8, %v3964_v7  ;;  %v5099_v8 = vpack.c.bf16 %v4000_v2, %v3999_v1 }
 0x30c   : > { %v4311_v27 = vpop.f32.mrb[6].mxu0 }
 0x30d   : > { %v4312_v29 = vpop.f32.mrb[7].mxu0 }
 0x30e   : > { %v4313_v31 = vadd.f32 %v4312_v29, %v4311_v27  ;;  %v3910_v27 = vld [vmem:[%s6752_s2 + $0x28] sm:$0xff]  ;;  %v3915_v29 = vld [vmem:[%s6751_s1 + $0x610] sm:$0xff] }
 0x310   : > { %4596 = vmatpush3.msk.msra.mxu1 %vm576_vm1, %v4313_v31  ;;  %v3933_v31 = vld [vmem:[%s6751_s1 + $0x6a0] sm:$0xff] }
 0x311   : > { %4598 = vmatmul.mubr.msk.f32.vlgmr.msra.gmra.mrb[10].mxu1 %vm572_vm2, %v3875_v32  ;;  %5004 = vmatprep.subr.bf16.mxu1 %v5003_v30  ;;  %v3916_v30 = vld [vmem:[%s6751_s1 + $0x618] sm:$0xff]  ;;  %v3934_v32 = vld [vmem:[%s6751_s1 + $0x6a8] sm:$0xff] }
 0x312   : > { %5006 = vmatpush3.bf16.msra.mxu1 %v5005_v33  ;;  %1369 = vmatprep.mubr.f32.mxu1 %v5552_v21  ;;  %v5041_v33 = vpack.c.bf16 %v3916_v30, %v3915_v29  ;;  %v3952_v29 = vld [vmem:[%s6751_s1 + $0x720] sm:$0xff]  ;;  %v3953_v30 = vld [vmem:[%s6751_s1 + $0x728] sm:$0xff] }
 0x313   : > { %5008 = vmatprep.subr.bf16.mxu1 %v5007_v34  ;;  %v5043_v34 = vpack.c.bf16 %v3934_v32, %v3933_v31  ;;  %v3970_v31 = vld [vmem:[%s6751_s1 + $0x7b0] sm:$0xff]  ;;  %v3971_v32 = vld [vmem:[%s6751_s1 + $0x7b8] sm:$0xff] }
 0x316   : > { %5010 = vmatpush3.bf16.msra.mxu1 %v5009_v39  ;;  %v5045_v39 = vpack.c.bf16 %v3918_v36, %v3917_v35  ;;  %v3954_v35 = vld [vmem:[%s6751_s1 + $0x730] sm:$0xff]  ;;  %v3955_v36 = vld [vmem:[%s6751_s1 + $0x738] sm:$0xff] }
 0x317   : > { %5012 = vmatprep.subr.bf16.mxu1 %v5011_v40  ;;  %v5047_v40 = vpack.c.bf16 %v3936_v38, %v3935_v37  ;;  %v3972_v37 = vld [vmem:[%s6751_s1 + $0x7c0] sm:$0xff]  ;;  %v3973_v38 = vld [vmem:[%s6751_s1 + $0x7c8] sm:$0xff] }
 0x31a   : > { %5014 = vmatpush3.bf16.msra.mxu1 %v5013_v45  ;;  %v5049_v45 = vpack.c.bf16 %v3920_v42, %v3919_v41  ;;  %v3956_v41 = vld [vmem:[%s6751_s1 + $0x740] sm:$0xff]  ;;  %v3957_v42 = vld [vmem:[%s6751_s1 + $0x748] sm:$0xff] }
 0x31b   : > { %5016 = vmatprep.subr.bf16.mxu1 %v5015_v46  ;;  %v5051_v46 = vpack.c.bf16 %v3938_v44, %v3937_v43  ;;  %v3974_v43 = vld [vmem:[%s6751_s1 + $0x7d0] sm:$0xff]  ;;  %v3975_v44 = vld [vmem:[%s6751_s1 + $0x7d8] sm:$0xff] }
 0x31e   : > { %5018 = vmatpush3.bf16.msra.mxu1 %v5017_v51  ;;  %v5053_v51 = vpack.c.bf16 %v3922_v48, %v3921_v47  ;;  %v3958_v47 = vld [vmem:[%s6751_s1 + $0x750] sm:$0xff]  ;;  %v3959_v48 = vld [vmem:[%s6751_s1 + $0x758] sm:$0xff] }
 0x31f   : > { %5020 = vmatprep.subr.bf16.mxu1 %v5019_v52  ;;  %v5055_v52 = vpack.c.bf16 %v3940_v50, %v3939_v49  ;;  %v3976_v49 = vld [vmem:[%s6751_s1 + $0x7e0] sm:$0xff]  ;;  %v3977_v50 = vld [vmem:[%s6751_s1 + $0x7e8] sm:$0xff] }
 0x322   : > { %5022 = vmatpush3.bf16.msra.mxu1 %v5021_v57  ;;  %v5057_v57 = vpack.c.bf16 %v3924_v54, %v3923_v53  ;;  %v3960_v53 = vld [vmem:[%s6751_s1 + $0x760] sm:$0xff]  ;;  %v3961_v54 = vld [vmem:[%s6751_s1 + $0x768] sm:$0xff] }
 0x323   : > { %5024 = vmatprep.subr.bf16.mxu1 %v5023_v58  ;;  %v5059_v58 = vpack.c.bf16 %v3942_v56, %v3941_v55  ;;  %v3978_v55 = vld [vmem:[%s6751_s1 + $0x7f0] sm:$0xff]  ;;  %v3979_v56 = vld [vmem:[%s6751_s1 + $0x7f8] sm:$0xff] }
 0x326   : > { %5026 = vmatpush3.bf16.msra.mxu1 %v5025_v63  ;;  %v5061_v63 = vpack.c.bf16 %v3926_v60, %v3925_v59  ;;  %v3962_v59 = vld [vmem:[%s6751_s1 + $0x770] sm:$0xff]  ;;  %v3963_v60 = vld [vmem:[%s6751_s1 + $0x778] sm:$0xff] }
 0x327   : > { %5028 = vmatprep.subr.bf16.mxu1 %v5027_v0  ;;  %v5063_v0 = vpack.c.bf16 %v3944_v62, %v3943_v61  ;;  %v5097_v61 = vpack.c.bf16 %v3963_v60, %v3962_v59 }
 0x32a   : > { %5030 = vmatpush3.bf16.msra.mxu1 %v5029_v5 }
 0x32b   : > { %5032 = vmatprep.subr.bf16.mxu1 %v5031_v6 }
 0x32e   : > { %5034 = vmatpush3.bf16.msra.mxu1 %v5033_v9  ;;  %v3948_v9 = vld [vmem:[%s6751_s1 + $0x700] sm:$0xff] }
 0x32f   : > { %4605 = vmatprep.subr.mxu1 %v5286_v19 }
 0x331   : > { %1370 = vmatmul.mubr.f32.vlgmr.msra.gmra.mrb[12].mxu1 %v5539_v16 }
 0x332   : > { %4607 = vmatprep.mubr.msk.f32.mxu1 %vm5287_vm0, %v5286_v19 }
 0x3e4   : > { %v1267_v10 = vpop.f32.mrb[10].mxu1 }
 0x3e5   : > { %v6020_v11 = vadd.f32 %v1267_v10, %v5911_v18  ;;  %v4599_v12 = vpop.f32.mrb[11].mxu1  ;;  %v3931_v18 = vld [vmem:[%s6751_s1 + $0x690] sm:$0xff]  ;;  %v3949_v10 = vld [vmem:[%s6751_s1 + $0x708] sm:$0xff] }
 0x3e6   : > { %v5039_v28 = vpack.c.bf16 %v3932_v22, %v3931_v18  ;;  %v5069_v18 = vpack.c.bf16 %v3949_v10, %v3948_v9  ;;  %v3980_v10 = vld [vmem:[%s6752_s2 + $0x38] sm:$0xff] }
 0x404   : > { %v4348_v20 = vpop.f32.mrb[12].mxu1 }
 0x405   : > { %v4349_v23 = vpop.f32.mrb[13].mxu1 }
 0x406   : > { %v4350_v25 = vadd.f32 %v4349_v23, %v4348_v20  ;;  %v3945_v20 = vld [vmem:[%s6752_s2 + $0x30] sm:$0xff] }
 0x407   : > { %v3950_v23 = vld [vmem:[%s6751_s1 + $0x710] sm:$0xff] }
 0x408   : > { %4601 = vmatpush3.msk.msra.mxu0 %vm576_vm1, %v4350_v25  ;;  %v3968_v25 = vld [vmem:[%s6751_s1 + $0x7a0] sm:$0xff] }
 0x409   : > { %4603 = vmatmul.mubr.msk.f32.vlgmr.msra.gmra.mrb[8].mxu0 %vm572_vm2, %v3910_v27  ;;  %5036 = vmatprep.subr.bf16.mxu0 %v5035_v24  ;;  %v3951_v24 = vld [vmem:[%s6751_s1 + $0x718] sm:$0xff]  ;;  %v3969_v27 = vld [vmem:[%s6751_s1 + $0x7a8] sm:$0xff] }
 0x40a   : > { %5038 = vmatpush3.bf16.msra.mxu0 %v5037_v26  ;;  %1551 = vmatprep.mubr.f32.mxu0 %v5552_v21  ;;  %v5073_v26 = vpack.c.bf16 %v3951_v24, %v3950_v23  ;;  %v3988_v23 = vld [vmem:[%s6751_s1 + $0x828] sm:$0xff]  ;;  %v4005_v24 = vld [vmem:[%s6751_s1 + $0x8b0] sm:$0xff] }
 0x40b   : > { %5040 = vmatprep.subr.bf16.mxu0 %v5039_v28  ;;  %v5075_v28 = vpack.c.bf16 %v3969_v27, %v3968_v25  ;;  %v4006_v25 = vld [vmem:[%s6751_s1 + $0x8b8] sm:$0xff] }
 0x40c   : > { %v5111_v27 = vpack.c.bf16 %v4006_v25, %v4005_v24  ;;  %v4021_v25 = vld [vmem:[%s6754_s4 + $0x50] sm:$0xff] }
 0x40e   : > { %5042 = vmatpush3.bf16.msra.mxu0 %v5041_v33  ;;  %v5077_v33 = vpack.c.bf16 %v3953_v30, %v3952_v29  ;;  %v4007_v29 = vld [vmem:[%s6751_s1 + $0x8c0] sm:$0xff]  ;;  %v4008_v30 = vld [vmem:[%s6751_s1 + $0x8c8] sm:$0xff] }
 0x40f   : > { %5044 = vmatprep.subr.bf16.mxu0 %v5043_v34  ;;  %v5079_v34 = vpack.c.bf16 %v3971_v32, %v3970_v31  ;;  %v5115_v32 = vpack.c.bf16 %v4008_v30, %v4007_v29  ;;  %v4025_v30 = vld [vmem:[%s6754_s4 + $0x70] sm:$0xff] }
 0x412   : > { %5046 = vmatpush3.bf16.msra.mxu0 %v5045_v39  ;;  %v5081_v39 = vpack.c.bf16 %v3955_v36, %v3954_v35  ;;  %v4009_v35 = vld [vmem:[%s6751_s1 + $0x8d0] sm:$0xff]  ;;  %v4010_v36 = vld [vmem:[%s6751_s1 + $0x8d8] sm:$0xff] }
 0x413   : > { %5048 = vmatprep.subr.bf16.mxu0 %v5047_v40  ;;  %v5083_v40 = vpack.c.bf16 %v3973_v38, %v3972_v37  ;;  %v5119_v38 = vpack.c.bf16 %v4010_v36, %v4009_v35  ;;  %v4036_v36 = vld [vmem:[%s6754_s4 + $0x90] sm:$0xff] }
 0x416   : > { %5050 = vmatpush3.bf16.msra.mxu0 %v5049_v45  ;;  %v5085_v45 = vpack.c.bf16 %v3957_v42, %v3956_v41  ;;  %v4011_v41 = vld [vmem:[%s6751_s1 + $0x8e0] sm:$0xff]  ;;  %v4012_v42 = vld [vmem:[%s6751_s1 + $0x8e8] sm:$0xff] }
 0x417   : > { %5052 = vmatprep.subr.bf16.mxu0 %v5051_v46  ;;  %v5087_v46 = vpack.c.bf16 %v3975_v44, %v3974_v43  ;;  %v5123_v44 = vpack.c.bf16 %v4012_v42, %v4011_v41  ;;  %v4040_v42 = vld [vmem:[%s6754_s4 + $0xb0] sm:$0xff] }
 0x41a   : > { %5054 = vmatpush3.bf16.msra.mxu0 %v5053_v51  ;;  %v5089_v51 = vpack.c.bf16 %v3959_v48, %v3958_v47  ;;  %v4013_v47 = vld [vmem:[%s6751_s1 + $0x8f0] sm:$0xff]  ;;  %v4014_v48 = vld [vmem:[%s6751_s1 + $0x8f8] sm:$0xff] }
 0x41b   : > { %5056 = vmatprep.subr.bf16.mxu0 %v5055_v52  ;;  %v5091_v52 = vpack.c.bf16 %v3977_v50, %v3976_v49  ;;  %v5127_v50 = vpack.c.bf16 %v4014_v48, %v4013_v47  ;;  %v4062_v48 = vld [vmem:[%s6754_s4 + $0x110] sm:$0xff] }
 0x41e   : > { %5058 = vmatpush3.bf16.msra.mxu0 %v5057_v57  ;;  %v5093_v57 = vpack.c.bf16 %v3961_v54, %v3960_v53  ;;  %v5277_v54 = vld [vmem:[%s5521_s30] sm:$0xff] }
 0x41f   : > { %5060 = vmatprep.subr.bf16.mxu0 %v5059_v58  ;;  %v5095_v58 = vpack.c.bf16 %v3979_v56, %v3978_v55  ;;  %v2000_v55 = vld [vmem:[%s6753_s3] sm:$0xff]  ;;  %v5288_v56 = vmov 0  }
 0x420   : > { %5274 = vset.pattern.permute.xlu0 %v5288_v56  ;;  %5275 = vset.pattern.permute.xlu1 %v5288_v56 }
 0x421   : > { %2003 = vperm.xlu0 %5274, %v2000_v55   ;;  %v4067_v55 = vld [vmem:[%s6754_s4 + $0x138] sm:$0xff] }
 0x422   : > { %5062 = vmatpush3.bf16.msra.mxu0 %v5061_v63 }
 0x423   : > { %5064 = vmatprep.subr.bf16.mxu0 %v5063_v0 }
 0x426   : > { %5066 = vmatpush3.bf16.msra.mxu0 %v5065_v3  ;;  %v3984_v3 = vld [vmem:[%s6751_s1 + $0x808] sm:$0xff] }
 0x427   : > { %4610 = vmatprep.subr.mxu0 %v5286_v19 }
 0x429   : > { %1552 = vmatmul.mubr.f32.vlgmr.msra.gmra.mrb[10].mxu0 %v5539_v16 }
 0x42a   : > { %4612 = vmatprep.mubr.msk.f32.mxu0 %vm5287_vm0, %v5286_v19 }
 0x4dc   : > { %v1449_v4 = vpop.f32.mrb[8].mxu0 }
 0x4dd   : > { %v6129_v5 = vadd.f32 %v1449_v4, %v6020_v11  ;;  %v4604_v6 = vpop.f32.mrb[9].mxu0  ;;  %v3966_v11 = vld [vmem:[%s6751_s1 + $0x790] sm:$0xff] }
 0x4de   : > { %v5071_v22 = vpack.c.bf16 %v3967_v13, %v3966_v11  ;;  %v4002_v6 = vld [vmem:[%s6751_s1 + $0x898] sm:$0xff]  ;;  %v3985_v13 = vld [vmem:[%s6751_s1 + $0x810] sm:$0xff] }
 0x4fc   : > { %v4385_v12 = vpop.f32.mrb[10].mxu0 }
 0x4fd   : > { %v4386_v14 = vpop.f32.mrb[11].mxu0 }
 0x4fe   : > { %v4387_v17 = vadd.f32 %v4386_v14, %v4385_v12  ;;  %v3986_v14 = vld [vmem:[%s6751_s1 + $0x818] sm:$0xff] }
 0x500   : > { %4606 = vmatpush3.msk.msra.mxu1 %vm576_vm1, %v4387_v17  ;;  %v4004_v17 = vld [vmem:[%s6751_s1 + $0x8a8] sm:$0xff] }
 0x501   : > { %4608 = vmatmul.mubr.msk.f32.vlgmr.msra.gmra.mrb[14].mxu1 %vm572_vm2, %v3945_v20  ;;  %5068 = vmatprep.subr.bf16.mxu1 %v5067_v15  ;;  %v4003_v15 = vld [vmem:[%s6751_s1 + $0x8a0] sm:$0xff]  ;;  %v5105_v20 = vpack.c.bf16 %v3986_v14, %v3985_v13 }
 0x502   : > { %5070 = vmatpush3.bf16.msra.mxu1 %v5069_v18  ;;  %1733 = vmatprep.mubr.f32.mxu1 %v5552_v21  ;;  %v5107_v18 = vpack.c.bf16 %v4004_v17, %v4003_v15  ;;  %v4019_v17 = vld [vmem:[%s6754_s4 + $0x40] sm:$0xff] }
 0x503   : > { %5072 = vmatprep.subr.bf16.mxu1 %v5071_v22  ;;  %v3987_v22 = vld [vmem:[%s6751_s1 + $0x820] sm:$0xff] }
 0x506   : > { %5074 = vmatpush3.bf16.msra.mxu1 %v5073_v26  ;;  %v3989_v26 = vld [vmem:[%s6751_s1 + $0x830] sm:$0xff] }
 0x507   : > { %5076 = vmatprep.subr.bf16.mxu1 %v5075_v28  ;;  %v3990_v28 = vld [vmem:[%s6751_s1 + $0x838] sm:$0xff] }
 0x508   : > { %v5113_v31 = vpack.c.bf16 %v3990_v28, %v3989_v26  ;;  %v4023_v26 = vld [vmem:[%s6754_s4 + $0x60] sm:$0xff]  ;;  %v4024_v28 = vld [vmem:[%s6754_s4 + $0x68] sm:$0xff] }
 0x509   : > { %v5150_v29 = vpack.c.bf16 %v4024_v28, %v4023_v26  ;;  %v2091_v26 = vld [vmem:[%s6755_s5 + $0x8] sm:$0xff]  ;;  %v4043_v28 = vld [vmem:[%s6755_s5 + $0x20] sm:$0xff] }
 0x50a   : > { %5078 = vmatpush3.bf16.msra.mxu1 %v5077_v33  ;;  %v3991_v33 = vld [vmem:[%s6751_s1 + $0x840] sm:$0xff] }
 0x50b   : > { %5080 = vmatprep.subr.bf16.mxu1 %v5079_v34  ;;  %v3992_v34 = vld [vmem:[%s6751_s1 + $0x848] sm:$0xff] }
 0x50c   : > { %v5117_v37 = vpack.c.bf16 %v3992_v34, %v3991_v33  ;;  %v4034_v33 = vld [vmem:[%s6754_s4 + $0x80] sm:$0xff]  ;;  %v4035_v34 = vld [vmem:[%s6754_s4 + $0x88] sm:$0xff] }
 0x50d   : > { %v5156_v35 = vpack.c.bf16 %v4035_v34, %v4034_v33 }
 0x50e   : > { %5082 = vmatpush3.bf16.msra.mxu1 %v5081_v39  ;;  %v3993_v39 = vld [vmem:[%s6751_s1 + $0x850] sm:$0xff] }
 0x50f   : > { %5084 = vmatprep.subr.bf16.mxu1 %v5083_v40  ;;  %v3994_v40 = vld [vmem:[%s6751_s1 + $0x858] sm:$0xff] }
 0x510   : > { %v5121_v43 = vpack.c.bf16 %v3994_v40, %v3993_v39  ;;  %v4038_v39 = vld [vmem:[%s6754_s4 + $0xa0] sm:$0xff]  ;;  %v4039_v40 = vld [vmem:[%s6754_s4 + $0xa8] sm:$0xff] }
 0x511   : > { %v5162_v41 = vpack.c.bf16 %v4039_v40, %v4038_v39  ;;  %v4052_v39 = vld [vmem:[%s6754_s4 + $0xe8] sm:$0xff] }
 0x512   : > { %5086 = vmatpush3.bf16.msra.mxu1 %v5085_v45  ;;  %v3995_v45 = vld [vmem:[%s6751_s1 + $0x860] sm:$0xff] }
 0x513   : > { %5088 = vmatprep.subr.bf16.mxu1 %v5087_v46  ;;  %v3996_v46 = vld [vmem:[%s6751_s1 + $0x868] sm:$0xff] }
 0x514   : > { %v5125_v49 = vpack.c.bf16 %v3996_v46, %v3995_v45  ;;  %v4060_v45 = vld [vmem:[%s6754_s4 + $0x100] sm:$0xff]  ;;  %v4061_v46 = vld [vmem:[%s6754_s4 + $0x108] sm:$0xff] }
 0x515   : > { %v5180_v47 = vpack.c.bf16 %v4061_v46, %v4060_v45 }
 0x516   : > { %5090 = vmatpush3.bf16.msra.mxu1 %v5089_v51  ;;  %v3997_v51 = vld [vmem:[%s6751_s1 + $0x870] sm:$0xff] }
 0x517   : > { %5092 = vmatprep.subr.bf16.mxu1 %v5091_v52  ;;  %v3998_v52 = vld [vmem:[%s6751_s1 + $0x878] sm:$0xff] }
 0x518   : > { %v5129_v53 = vpack.c.bf16 %v3998_v52, %v3997_v51  ;;  %v4064_v51 = vld [vmem:[%s6754_s4 + $0x120] sm:$0xff]  ;;  %v4065_v52 = vld [vmem:[%s6754_s4 + $0x128] sm:$0xff] }
 0x51a   : > { %5094 = vmatpush3.bf16.msra.mxu1 %v5093_v57  ;;  %v3492_v57 = vld [vmem:[%s6756_s6] sm:$0xff] }
 0x51b   : > { %5096 = vmatprep.subr.bf16.mxu1 %v5095_v58  ;;  %3496 = vperm.xlu0 %5274, %v3492_v57   ;;  %v4086_v57 = vld [vmem:[%s6754_s4 + $0x180] sm:$0xff] }
 0x51e   : > { %5098 = vmatpush3.bf16.msra.mxu1 %v5097_v61  ;;  %v2008_v61 = vld [vmem:[%s6754_s4] sm:$0xff] }
 0x51f   : > { %4615 = vmatprep.subr.mxu1 %v5286_v19 }
 0x521   : > { %1734 = vmatmul.mubr.f32.vlgmr.msra.gmra.mrb[16].mxu1 %v5539_v16  ;;  %v3983_v16 = vld [vmem:[%s6751_s1 + $0x800] sm:$0xff] }
 0x522   : > { %4617 = vmatprep.mubr.msk.f32.mxu1 %vm5287_vm0, %v5286_v19  ;;  %v5101_v12 = vpack.c.bf16 %v3984_v3, %v3983_v16  ;;  %v4015_v16 = vld [vmem:[%s6752_s2 + $0x40] sm:$0xff] }
 0x5d4   : > { %v1631_v62 = vpop.f32.mrb[14].mxu1 }
 0x5d5   : > { %v6238_v63 = vadd.f32 %v1631_v62, %v6129_v5  ;;  %v4609_v0 = vpop.f32.mrb[15].mxu1  ;;  %v4001_v5 = vld [vmem:[%s6751_s1 + $0x890] sm:$0xff]  ;;  %v2009_v62 = vld [vmem:[%s6754_s4 + $0x8] sm:$0xff] }
 0x5d6   : > { %v5103_v11 = vpack.c.bf16 %v4002_v6, %v4001_v5  ;;  %v5132_v3 = vpack.c.bf16 %v2009_v62, %v2008_v61  ;;  %v5289_v5 = vmov 0.0|0.0   ;;  %v4089_v61 = vld [vmem:[%s6754_s4 + $0x198] sm:$0xff] }
 0x5f4   : > { %v4422_v4 = vpop.f32.mrb[16].mxu1 }
 0x5f5   : > { %v4423_v7 = vpop.f32.mrb[17].mxu1 }
 0x5f6   : > { %v4424_v9 = vadd.f32 %v4423_v7, %v4422_v4  ;;  %v2011_v4 = vld [vmem:[%s6754_s4 + $0x18] sm:$0xff]  ;;  %v2012_v7 = vld [vmem:[%s6754_s4 + $0x20] sm:$0xff] }
 0x5f8   : > { %4611 = vmatpush3.msk.msra.mxu0 %vm576_vm1, %v4424_v9 }
 0x5f9   : > { %4613 = vmatmul.mubr.msk.f32.vlgmr.msra.gmra.mrb[12].mxu0 %vm572_vm2, %v3980_v10  ;;  %5100 = vmatprep.subr.bf16.mxu0 %v5099_v8  ;;  %v2013_v8 = vld [vmem:[%s6754_s4 + $0x28] sm:$0xff]  ;;  %v2014_v10 = vld [vmem:[%s6754_s4 + $0x30] sm:$0xff] }
 0x5fa   : > { %5102 = vmatpush3.bf16.msra.mxu0 %v5101_v12  ;;  %1915 = vmatprep.mubr.f32.mxu0 %v5552_v21  ;;  %v5109_v21 = vpack.c.bf16 %v3988_v23, %v3987_v22  ;;  %v5138_v9 = vpack.c.bf16 %v2013_v8, %v2012_v7  ;;  %v2015_v12 = vld [vmem:[%s6754_s4 + $0x38] sm:$0xff]  ;;  %v4101_v8 = vld [vmem:[%s6754_s4 + $0x1d0] sm:$0xff] }
 0x5fb   : > { %5104 = vmatprep.subr.bf16.mxu0 %v5103_v11  ;;  %v5141_v11 = vpack.c.bf16 %v2015_v12, %v2014_v10  ;;  %v4103_v12 = vld [vmem:[%s6754_s4 + $0x1e0] sm:$0xff] }
 0x5fe   : > { %5106 = vmatpush3.bf16.msra.mxu0 %v5105_v20  ;;  %v4020_v20 = vld [vmem:[%s6754_s4 + $0x48] sm:$0xff] }
 0x5ff   : > { %5108 = vmatprep.subr.bf16.mxu0 %v5107_v18  ;;  %v2004_v18 = vpop.permute.xlu0 %2003  ;;  %v5144_v23 = vpack.c.bf16 %v4020_v20, %v4019_v17  ;;  %v4028_v20 = vld [vmem:[%s6755_s5 + $0x10] sm:$0xff] }
 0x602   : > { %5110 = vmatpush3.bf16.msra.mxu0 %v5109_v21  ;;  %v4022_v21 = vld [vmem:[%s6754_s4 + $0x58] sm:$0xff] }
 0x603   : > { %5112 = vmatprep.subr.bf16.mxu0 %v5111_v27  ;;  %v5147_v27 = vpack.c.bf16 %v4022_v21, %v4021_v25  ;;  %v4029_v25 = vld [vmem:[%s6755_s5 + $0x18] sm:$0xff] }
 0x606   : > { %5114 = vmatpush3.bf16.msra.mxu0 %v5113_v31  ;;  %v4026_v31 = vld [vmem:[%s6754_s4 + $0x78] sm:$0xff] }
 0x607   : > { %5116 = vmatprep.subr.bf16.mxu0 %v5115_v32  ;;  %v5153_v32 = vpack.c.bf16 %v4026_v31, %v4025_v30  ;;  %v4048_v30 = vld [vmem:[%s6754_s4 + $0xc8] sm:$0xff] }
 0x60a   : > { %5118 = vmatpush3.bf16.msra.mxu0 %v5117_v37  ;;  %v4037_v37 = vld [vmem:[%s6754_s4 + $0x98] sm:$0xff] }
 0x60b   : > { %5120 = vmatprep.subr.bf16.mxu0 %v5119_v38  ;;  %v5159_v38 = vpack.c.bf16 %v4037_v37, %v4036_v36  ;;  %v4050_v36 = vld [vmem:[%s6754_s4 + $0xd8] sm:$0xff] }
 0x60e   : > { %5122 = vmatpush3.bf16.msra.mxu0 %v5121_v43  ;;  %v4041_v43 = vld [vmem:[%s6754_s4 + $0xb8] sm:$0xff] }
 0x60f   : > { %5124 = vmatprep.subr.bf16.mxu0 %v5123_v44  ;;  %v5165_v44 = vpack.c.bf16 %v4041_v43, %v4040_v42  ;;  %v4054_v42 = vld [vmem:[%s6754_s4 + $0xf8] sm:$0xff] }
 0x612   : > { %5126 = vmatpush3.bf16.msra.mxu0 %v5125_v49  ;;  %v4063_v49 = vld [vmem:[%s6754_s4 + $0x118] sm:$0xff] }
 0x613   : > { %5128 = vmatprep.subr.bf16.mxu0 %v5127_v50  ;;  %v5183_v50 = vpack.c.bf16 %v4063_v49, %v4062_v48 }
 0x616   : > { %5130 = vmatpush3.bf16.msra.mxu0 %v5129_v53  ;;  %v5186_v53 = vpack.c.bf16 %v4065_v52, %v4064_v51  ;;  %v4057_v52 = vld [vmem:[%s6755_s5 + $0x38] sm:$0xff] }
 0x619   : > { %1916 = vmatmul.mubr.f32.vlgmr.msra.gmra.mrb[14].mxu0 %v5277_v54  ;;  %v4066_v54 = vld [vmem:[%s6754_s4 + $0x130] sm:$0xff] }
 0x61a   : > { %v5189_v56 = vpack.c.bf16 %v4067_v55, %v4066_v54  ;;  %4660 = vmatprep.mubr.msk.f32.mxu0 %vm2174_vm4, %v4028_v20  ;;  %v4069_v54 = vld [vmem:[%s6755_s5 + $0x40] sm:$0xff] }
 0x61b   : > { %v4073_v55 = vld [vmem:[%s6754_s4 + $0x140] sm:$0xff] }
 0x6cc   : > { %v1813_v58 = vpop.f32.mrb[12].mxu0 }
 0x6cd   : > { %v1817_v59 = vadd.f32 %v1813_v58, %v6238_v63  ;;  %v4614_v60 = vpop.f32.mrb[13].mxu0  ;;  %v2010_v63 = vld [vmem:[%s6754_s4 + $0x10] sm:$0xff]  ;;  %v4087_v58 = vld [vmem:[%s6754_s4 + $0x188] sm:$0xff] }
 0x6ce   : > { %v5135_v6 = vpack.c.bf16 %v2011_v4, %v2010_v63  ;;  %v4088_v60 = vld [vmem:[%s6754_s4 + $0x190] sm:$0xff]  ;;  %v4099_v4 = vld [vmem:[%s6754_s4 + $0x1c0] sm:$0xff] }
 0x6cf   : > { %v5207_v62 = vpack.c.bf16 %v4089_v61, %v4088_v60  ;;  %v4076_v60 = vld [vmem:[%s6754_s4 + $0x158] sm:$0xff] }
 0x6ec   : > { %v4459_v0 = vpop.f32.mrb[14].mxu0 }
 0x6ed   : > { %v4460_v1 = vpop.f32.mrb[15].mxu0 }
 0x6ee   : > { %v4461_v2 = vadd.f32 %v4460_v1, %v4459_v0  ;;  %v4090_v0 = vld [vmem:[%s6754_s4 + $0x1a0] sm:$0xff]  ;;  %v4091_v1 = vld [vmem:[%s6754_s4 + $0x1a8] sm:$0xff] }
 0x6f0   : > { %4616 = vmatpush3.msk.msra.mxu1 %vm576_vm1, %v4461_v2  ;;  %v5210_v2 = vpack.c.bf16 %v4091_v1, %v4090_v0  ;;  %v4078_v0 = vld [vmem:[%s6754_s4 + $0x168] sm:$0xff] }
 0x6f1   : > { %4618 = vmatmul.mubr.msk.f32.vlgmr.msra.gmra.mrb[18].mxu1 %vm572_vm2, %v4015_v16  ;;  %5131 = vmatprep.subr.bf16.mxu1 %v5289_v5  ;;  %v4092_v16 = vld [vmem:[%s6754_s4 + $0x1b0] sm:$0xff] }
 0x6f2   : > { %5133 = vmatpush3.bf16.msra.mxu1 %v5132_v3  ;;  %4636 = vmatprep.mubr.msk.f32.mxu1 %vm5287_vm0, %v5286_v19  ;;  %v4093_v3 = vld [vmem:[%s6754_s4 + $0x1b8] sm:$0xff] }
 0x6f3   : > { %5134 = vmatprep.subr.bf16.mxu1 %v5289_v5  ;;  %v5213_v63 = vpack.c.bf16 %v4093_v3, %v4092_v16  ;;  %v4080_v16 = vld [vmem:[%s6754_s4 + $0x178] sm:$0xff] }
 0x6f6   : > { %5136 = vmatpush3.bf16.msra.mxu1 %v5135_v6  ;;  %v4100_v6 = vld [vmem:[%s6754_s4 + $0x1c8] sm:$0xff] }
 0x6f7   : > { %5137 = vmatprep.subr.bf16.mxu1 %v5289_v5  ;;  %v5216_v7 = vpack.c.bf16 %v4100_v6, %v4099_v4  ;;  %v4083_v6 = vld [vmem:[%s6755_s5 + $0x58] sm:$0xff] }
 0x6fa   : > { %5139 = vmatpush3.bf16.msra.mxu1 %v5138_v9  ;;  %v4102_v9 = vld [vmem:[%s6754_s4 + $0x1d8] sm:$0xff] }
 0x6fb   : > { %5140 = vmatprep.subr.bf16.mxu1 %v5289_v5  ;;  %v5219_v10 = vpack.c.bf16 %v4102_v9, %v4101_v8  ;;  %v4095_v8 = vld [vmem:[%s6755_s5 + $0x60] sm:$0xff]  ;;  %v4096_v9 = vld [vmem:[%s6755_s5 + $0x68] sm:$0xff] }
 0x6fe   : > { %5142 = vmatpush3.bf16.msra.mxu1 %v5141_v11  ;;  %v4104_v11 = vld [vmem:[%s6754_s4 + $0x1e8] sm:$0xff] }
 0x6ff   : > { %5143 = vmatprep.subr.bf16.mxu1 %v5289_v5 }
 0x7c4   : > { %v1995_v13 = vpop.f32.mrb[18].mxu1 }
 0x7c5   : > { %v1999_v14 = vadd.f32 %v1995_v13, %v1817_v59  ;;  %v4619_v15 = vpop.f32.mrb[19].mxu1  ;;  %v5204_v59 = vpack.c.bf16 %v4087_v58, %v4086_v57  ;;  %v5222_v13 = vpack.c.bf16 %v4104_v11, %v4103_v12  ;;  %v4070_v57 = vld [vmem:[%s6755_s5 + $0x48] sm:$0xff]  ;;  %v4112_v12 = vld [vmem:[%s6754_s4 + $0x200] sm:$0xff] }
 0x7c6   : > { %v4106_v15 = vld [vmem:[%s6754_s4 + $0x1f8] sm:$0xff]  ;;  %v4113_v11 = vld [vmem:[%s6754_s4 + $0x208] sm:$0xff] }
 0x7c7   : > { %v2006_v22 = vadd.f32 %v2004_v18, %v1999_v14  ;;  %v4105_v14 = vld [vmem:[%s6754_s4 + $0x1f0] sm:$0xff] }
 0x7c8   : > { %v5225_v17 = vpack.c.bf16 %v4106_v15, %v4105_v14  ;;  %v5228_v14 = vpack.c.bf16 %v4113_v11, %v4112_v12  ;;  %v4114_v15 = vld [vmem:[%s6754_s4 + $0x210] sm:$0xff] }
 0x7c9   : > { %v6392_v24 = vmax.f32 %v2006_v22, 0.0 }
 0x7cb   : > { %4637 = vmatmul.mubr.msk.f32.vlgmr.msra.gmra.mrb[20].mxu1 %vm2016_vm3, %v6392_v24 }
 0x7cc   : > { %5145 = vmatpush3.bf16.msra.mxu1 %v5144_v23  ;;  %4655 = vmatprep.mubr.msk.f32.mxu1 %vm5287_vm0, %v5286_v19 }
 0x7cd   : > { %5146 = vmatprep.subr.bf16.mxu1 %v5289_v5 }
 0x7d0   : > { %5148 = vmatpush3.bf16.msra.mxu1 %v5147_v27  ;;  %v2090_v27 = vld [vmem:[%s6755_s5] sm:$0xff] }
 0x7d1   : > { %5149 = vmatprep.subr.bf16.mxu1 %v5289_v5 }
 0x7d4   : > { %5151 = vmatpush3.bf16.msra.mxu1 %v5150_v29  ;;  %v4047_v29 = vld [vmem:[%s6754_s4 + $0xc0] sm:$0xff] }
 0x7d5   : > { %5152 = vmatprep.subr.bf16.mxu1 %v5289_v5  ;;  %v5168_v33 = vpack.c.bf16 %v4048_v30, %v4047_v29  ;;  %v3509_v29 = vld [vmem:[%s6758_s8] sm:$0x7] }
 0x7d8   : > { %5154 = vmatpush3.bf16.msra.mxu1 %v5153_v32  ;;  %v4044_v32 = vld [vmem:[%s6755_s5 + $0x28] sm:$0xff] }
 0x7d9   : > { %5155 = vmatprep.subr.bf16.mxu1 %v5289_v5 }
 0x7db   : > { %4656 = vmatmul.mubr.msk.f32.vlgmr.msra.gmra.mrb[22].mxu1 %vm2016_vm3, %v6392_v24 }
 0x7dc   : > { %5157 = vmatpush3.bf16.msra.mxu1 %v5156_v35  ;;  %4684 = vmatprep.mubr.msk.f32.mxu1 %vm5287_vm0, %v5286_v19  ;;  %v4049_v35 = vld [vmem:[%s6754_s4 + $0xd0] sm:$0xff] }
 0x7dd   : > { %5158 = vmatprep.subr.bf16.mxu1 %v5289_v5  ;;  %v5171_v37 = vpack.c.bf16 %v4050_v36, %v4049_v35 }
 0x7e0   : > { %5160 = vmatpush3.bf16.msra.mxu1 %v5159_v38  ;;  %v4051_v38 = vld [vmem:[%s6754_s4 + $0xe0] sm:$0xff] }
 0x7e1   : > { %5161 = vmatprep.subr.bf16.mxu1 %v5289_v5  ;;  %v5174_v40 = vpack.c.bf16 %v4052_v39, %v4051_v38  ;;  %v3592_v38 = vld [vmem:[%s6759_s9 + $0x18] sm:$0xff] }
 0x7e4   : > { %5163 = vmatpush3.bf16.msra.mxu1 %v5162_v41  ;;  %v4053_v41 = vld [vmem:[%s6754_s4 + $0xf0] sm:$0xff] }
 0x7e5   : > { %5164 = vmatprep.subr.bf16.mxu1 %v5289_v5  ;;  %v5177_v43 = vpack.c.bf16 %v4054_v42, %v4053_v41 }
 0x7e8   : > { %5166 = vmatpush3.bf16.msra.mxu1 %v5165_v44 }
 0x7e9   : > { %5179 = vmatprep.subr.bf16.mxu1 %v5289_v5 }
 0x7eb   : > { %4685 = vmatmul.mubr.msk.f32.vlgmr.msra.gmra.mrb[24].mxu1 %vm2016_vm3, %v6392_v24 }
 0x7ec   : > { %5181 = vmatpush3.bf16.msra.mxu1 %v5180_v47  ;;  %4732 = vmatprep.mubr.msk.f32.mxu1 %vm5287_vm0, %v5286_v19 }
 0x7ed   : > { %5182 = vmatprep.subr.bf16.mxu1 %v5289_v5 }
 0x7f0   : > { %5184 = vmatpush3.bf16.msra.mxu1 %v5183_v50  ;;  %v4056_v50 = vld [vmem:[%s6755_s5 + $0x30] sm:$0xff] }
 0x7f1   : > { %5185 = vmatprep.subr.bf16.mxu1 %v5289_v5 }
 0x7f4   : > { %5187 = vmatpush3.bf16.msra.mxu1 %v5186_v53 }
 0x7f5   : > { %5188 = vmatprep.subr.bf16.mxu1 %v5289_v5 }
 0x7f8   : > { %5190 = vmatpush3.bf16.msra.mxu1 %v5189_v56  ;;  %v4074_v56 = vld [vmem:[%s6754_s4 + $0x148] sm:$0xff] }
 0x7f9   : > { %5203 = vmatprep.subr.bf16.mxu1 %v5289_v5  ;;  %v5192_v58 = vpack.c.bf16 %v4074_v56, %v4073_v55 }
 0x7fb   : > { %4733 = vmatmul.mubr.msk.f32.vlgmr.msra.gmra.mrb[26].mxu1 %vm2016_vm3, %v6392_v24 }
 0x7fc   : > { %5205 = vmatpush3.bf16.msra.mxu1 %v5204_v59  ;;  %4780 = vmatprep.mubr.msk.f32.mxu1 %vm5287_vm0, %v5286_v19  ;;  %v4075_v59 = vld [vmem:[%s6754_s4 + $0x150] sm:$0xff] }
 0x7fd   : > { %5206 = vmatprep.subr.bf16.mxu1 %v5289_v5  ;;  %v5195_v61 = vpack.c.bf16 %v4076_v60, %v4075_v59 }
 0x800   : > { %5208 = vmatpush3.bf16.msra.mxu1 %v5207_v62  ;;  %v4077_v62 = vld [vmem:[%s6754_s4 + $0x160] sm:$0xff] }
 0x801   : > { %5209 = vmatprep.subr.bf16.mxu1 %v5289_v5  ;;  %v5198_v1 = vpack.c.bf16 %v4078_v0, %v4077_v62 }
 0x804   : > { %5211 = vmatpush3.bf16.msra.mxu1 %v5210_v2  ;;  %v4079_v2 = vld [vmem:[%s6754_s4 + $0x170] sm:$0xff] }
 0x805   : > { %5212 = vmatprep.subr.bf16.mxu1 %v5289_v5  ;;  %v5201_v3 = vpack.c.bf16 %v4080_v16, %v4079_v2 }
 0x808   : > { %5214 = vmatpush3.bf16.msra.mxu1 %v5213_v63  ;;  %v4082_v63 = vld [vmem:[%s6755_s5 + $0x50] sm:$0xff] }
 0x809   : > { %5215 = vmatprep.subr.bf16.mxu1 %v5289_v5 }
 0x80b   : > { %4781 = vmatmul.mubr.msk.f32.vlgmr.msra.gmra.mrb[28].mxu1 %vm2016_vm3, %v6392_v24 }
 0x80c   : > { %5217 = vmatpush3.bf16.msra.mxu1 %v5216_v7  ;;  %4804 = vmatprep.mubr.msk.f32.mxu1 %vm5287_vm0, %v5286_v19 }
 0x80d   : > { %5218 = vmatprep.subr.bf16.mxu1 %v5289_v5 }
 0x810   : > { %5220 = vmatpush3.bf16.msra.mxu1 %v5219_v10  ;;  %v4108_v10 = vld [vmem:[%s6755_s5 + $0x70] sm:$0xff] }
 0x811   : > { %5221 = vmatprep.subr.bf16.mxu1 %v5289_v5 }
 0x814   : > { %5223 = vmatpush3.bf16.msra.mxu1 %v5222_v13  ;;  %v4109_v13 = vld [vmem:[%s6755_s5 + $0x78] sm:$0xff] }
 0x815   : > { %5224 = vmatprep.subr.bf16.mxu1 %v5289_v5 }
 0x818   : > { %5226 = vmatpush3.bf16.msra.mxu1 %v5225_v17  ;;  %v4115_v17 = vld [vmem:[%s6754_s4 + $0x218] sm:$0xff] }
 0x819   : > { %5239 = vmatprep.subr.bf16.mxu1 %v5289_v5  ;;  %v5231_v20 = vpack.c.bf16 %v4115_v17, %v4114_v15 }
 0x81b   : > { %4805 = vmatmul.mubr.msk.f32.vlgmr.msra.gmra.mrb[30].mxu1 %vm2016_vm3, %v6392_v24 }
 0x81c   : > { %4840 = vmatprep.mubr.msk.f32.mxu1 %vm5287_vm0, %v5286_v19 }
 0x89e   : > { %v2086_v18 = vpop.f32.mrb[20].mxu1 }
 0x89f   : > { %v4638_v22 = vpop.f32.mrb[21].mxu1 }
 0x8a0   : > { %v4117_v22 = vld [vmem:[%s6754_s4 + $0x228] sm:$0xff] }
 0x8ae   : > { %v2167_v23 = vpop.f32.mrb[22].mxu1 }
 0x8af   : > { %v4657_v21 = vpop.f32.mrb[23].mxu1  ;;  %4658 = vmatprep.subr.mxu0 %v2167_v23 }
 0x8b0   : > { %4659 = vmatpush3.msra.mxu0 %v2167_v23  ;;  %v4119_v21 = vld [vmem:[%s6754_s4 + $0x238] sm:$0xff] }
 0x8b1   : > { %4663 = vmatprep.subr.mxu0 %v2086_v18  ;;  %4661 = vmatmul.mubr.msk.f32.vlgmr.msra.gmra.mrb[16].mxu0 %vm2174_vm4, %v4029_v25  ;;  %v4118_v25 = vld [vmem:[%s6754_s4 + $0x230] sm:$0xff] }
 0x8b2   : > { %4664 = vmatpush3.msra.mxu0 %v2086_v18  ;;  %4665 = vmatprep.mubr.msk.f32.mxu0 %vm2174_vm4, %v2090_v27  ;;  %v4116_v18 = vld [vmem:[%s6754_s4 + $0x220] sm:$0xff]  ;;  %v5237_v27 = vpack.c.bf16 %v4119_v21, %v4118_v25 }
 0x8b3   : > { %v5234_v23 = vpack.c.bf16 %v4117_v22, %v4116_v18 }
 0x8b9   : > { %4666 = vmatmul.mubr.msk.f32.vlgmr.msra.gmra.mrb[16].mxu0 %vm2174_vm4, %v2091_v26  ;;  %v4121_v26 = vld [vmem:[%s6755_s5 + $0x80] sm:$0xff] }
 0x8ba   : > { %4689 = vmatprep.mubr.msk.f32.mxu0 %vm2174_vm4, %v4043_v28  ;;  %v3493_v28 = vld [vmem:[%s6756_s6 + $0x8] sm:$0xff] }
 0x8bb   : > { %3501 = vperm.xlu1 %5275, %v3493_v28  }
 0x8be   : > { %v2412_v31 = vpop.f32.mrb[24].mxu1 }
 0x8bf   : > { %v4686_v34 = vpop.f32.mrb[25].mxu1  ;;  %4687 = vmatprep.subr.mxu0 %v2412_v31  ;;  %3512 = vperm.xlu1 %5275, %v3509_v29  }
 0x8c0   : > { %4688 = vmatpush3.msra.mxu0 %v2412_v31 }
 0x8c1   : > { %5167 = vmatprep.subr.bf16.mxu0 %v5289_v5  ;;  %4690 = vmatmul.mubr.msk.f32.vlgmr.msra.gmra.mrb[16].mxu0 %vm2174_vm4, %v4044_v32 }
 0x8c2   : > { %5169 = vmatpush3.bf16.msra.mxu0 %v5168_v33  ;;  %4708 = vmatprep.mubr.msk.f32.mxu0 %vm5287_vm0, %v5286_v19  ;;  %v3497_v33 = vpop.permute.xlu0 %3496 }
 0x8c3   : > { %5170 = vmatprep.subr.bf16.mxu0 %v5289_v5 }
 0x8c6   : > { %5172 = vmatpush3.bf16.msra.mxu0 %v5171_v37  ;;  %v3590_v37 = vld [vmem:[%s6759_s9 + $0x8] sm:$0xff] }
 0x8c7   : > { %5173 = vmatprep.subr.bf16.mxu0 %v5289_v5  ;;  %v5242_v41 = vpack.c.bf16 %v3592_v38, %v3590_v37 }
 0x8ca   : > { %5175 = vmatpush3.bf16.msra.mxu0 %v5174_v40 }
 0x8cb   : > { %5176 = vmatprep.subr.bf16.mxu0 %v5289_v5 }
 0x8ce   : > { %5178 = vmatpush3.bf16.msra.mxu0 %v5177_v43  ;;  %v2742_v44 = vpop.f32.mrb[26].mxu1  ;;  %v3508_v43 = vld [vmem:[%s6757_s7] sm:$0x7] }
 0x8cf   : > { %v4734_v45 = vpop.f32.mrb[27].mxu1 }
 0x8d0   : > { %v3591_v45 = vld [vmem:[%s6759_s9 + $0x10] sm:$0xff] }
 0x8d1   : > { %4709 = vmatmul.mubr.msk.f32.vlgmr.msra.gmra.mrb[18].mxu0 %vm2016_vm3, %v6392_v24 }
 0x8d2   : > { %4713 = vmatprep.mubr.msk.f32.mxu0 %vm2174_vm4, %v4056_v50 }
 0x8de   : > { %v3072_v46 = vpop.f32.mrb[28].mxu1 }
 0x8df   : > { %v4782_v47 = vpop.f32.mrb[29].mxu1 }
 0x8ee   : > { %v3237_v48 = vpop.f32.mrb[30].mxu1 }
 0x8ef   : > { %v4806_v49 = vpop.f32.mrb[31].mxu1 }
 0x93a   : > { %v3502_v31 = vpop.permute.xlu1 %3501 }
 0x93e   : > { %v3513_v47 = vpop.permute.xlu1 %3512 }
 0x9a4   : > { %v2577_v51 = vpop.f32.mrb[18].mxu0 }
 0x9a5   : > { %v4710_v53 = vpop.f32.mrb[19].mxu0  ;;  %4711 = vmatprep.subr.mxu0 %v2577_v51 }
 0x9a6   : > { %4712 = vmatpush3.msra.mxu0 %v2577_v51 }
 0x9a7   : > { %4714 = vmatmul.mubr.msk.f32.vlgmr.msra.gmra.mrb[16].mxu0 %vm2174_vm4, %v4057_v52  ;;  %4735 = vmatprep.subr.mxu0 %v2742_v44 }
 0x9a8   : > { %4736 = vmatpush3.msra.mxu0 %v2742_v44  ;;  %4737 = vmatprep.mubr.msk.f32.mxu0 %vm2174_vm4, %v4069_v54  ;;  %v3589_v44 = vld [vmem:[%s6759_s9] sm:$0xff] }
 0x9a9   : > { %5191 = vmatprep.subr.bf16.mxu0 %v5289_v5 }
 0x9af   : > { %4738 = vmatmul.mubr.msk.f32.vlgmr.msra.gmra.mrb[16].mxu0 %vm2174_vm4, %v4070_v57 }
 0x9b0   : > { %5193 = vmatpush3.bf16.msra.mxu0 %v5192_v58  ;;  %4756 = vmatprep.mubr.msk.f32.mxu0 %vm5287_vm0, %v5286_v19 }
 0x9b1   : > { %5194 = vmatprep.subr.bf16.mxu0 %v5289_v5 }
 0x9b4   : > { %5196 = vmatpush3.bf16.msra.mxu0 %v5195_v61 }
 0x9b5   : > { %5197 = vmatprep.subr.bf16.mxu0 %v5289_v5 }
 0x9b8   : > { %5199 = vmatpush3.bf16.msra.mxu0 %v5198_v1 }
 0x9b9   : > { %5200 = vmatprep.subr.bf16.mxu0 %v5289_v5 }
 0x9bc   : > { %5202 = vmatpush3.bf16.msra.mxu0 %v5201_v3 }
 0x9bf   : > { %4757 = vmatmul.mubr.msk.f32.vlgmr.msra.gmra.mrb[20].mxu0 %vm2016_vm3, %v6392_v24 }
 0x9c0   : > { %4761 = vmatprep.mubr.msk.f32.mxu0 %vm2174_vm4, %v4082_v63 }
 0xa92   : > { %v2907_v4 = vpop.f32.mrb[20].mxu0 }
 0xa93   : > { %v4758_v7 = vpop.f32.mrb[21].mxu0  ;;  %4759 = vmatprep.subr.mxu0 %v2907_v4 }
 0xa94   : > { %4760 = vmatpush3.msra.mxu0 %v2907_v4 }
 0xa95   : > { %4762 = vmatmul.mubr.msk.f32.vlgmr.msra.gmra.mrb[16].mxu0 %vm2174_vm4, %v4083_v6  ;;  %4783 = vmatprep.subr.mxu0 %v3072_v46 }
 0xa96   : > { %4784 = vmatpush3.msra.mxu0 %v3072_v46  ;;  %4785 = vmatprep.mubr.msk.f32.mxu0 %vm2174_vm4, %v4095_v8  ;;  %v5244_v46 = vpack.c.bf16 %v3591_v45, %v3589_v44 }
 0xa97   : > { %4807 = vmatprep.subr.mxu0 %v3237_v48 }
 0xa9d   : > { %4786 = vmatmul.mubr.msk.f32.vlgmr.msra.gmra.mrb[16].mxu0 %vm2174_vm4, %v4096_v9 }
 0xa9e   : > { %4808 = vmatpush3.msra.mxu0 %v3237_v48  ;;  %4809 = vmatprep.mubr.msk.f32.mxu0 %vm2174_vm4, %v4108_v10 }
 0xa9f   : > { %5227 = vmatprep.subr.bf16.mxu0 %v5289_v5 }
 0xaa5   : > { %4810 = vmatmul.mubr.msk.f32.vlgmr.msra.gmra.mrb[16].mxu0 %vm2174_vm4, %v4109_v13 }
 0xaa6   : > { %5229 = vmatpush3.bf16.msra.mxu0 %v5228_v14  ;;  %4828 = vmatprep.mubr.msk.f32.mxu0 %vm5287_vm0, %v5286_v19 }
 0xaa7   : > { %5230 = vmatprep.subr.bf16.mxu0 %v5289_v5 }
 0xaaa   : > { %5232 = vmatpush3.bf16.msra.mxu0 %v5231_v20 }
 0xaab   : > { %5233 = vmatprep.subr.bf16.mxu0 %v5289_v5 }
 0xaae   : > { %5235 = vmatpush3.bf16.msra.mxu0 %v5234_v23 }
 0xaaf   : > { %5236 = vmatprep.subr.bf16.mxu0 %v5289_v5 }
 0xab2   : > { %5238 = vmatpush3.bf16.msra.mxu0 %v5237_v27 }
 0xab5   : > { %4829 = vmatmul.mubr.msk.f32.vlgmr.msra.gmra.mrb[22].mxu0 %vm2016_vm3, %v6392_v24  ;;  %v4122_v24 = vld [vmem:[%s6755_s5 + $0x88] sm:$0xff] }
 0xab6   : > { %4833 = vmatprep.mubr.msk.f32.mxu0 %vm2174_vm4, %v4121_v26 }
 0xb88   : > { %v3402_v5 = vpop.f32.mrb[22].mxu0 }
 0xb89   : > { %v4830_v30 = vpop.f32.mrb[23].mxu0  ;;  %4831 = vmatprep.subr.mxu0 %v3402_v5 }
 0xb8a   : > { %4832 = vmatpush3.msra.mxu0 %v3402_v5 }
 0xb8b   : > { %4834 = vmatmul.mubr.msk.f32.vlgmr.msra.gmra.mrb[16].mxu0 %vm2174_vm4, %v4122_v24 }
 0xc5e   : > { %v4835_v32 = vpop.f32.mrb[16].mxu0 }
 0xc5f   : > { %v3505_v34 = vadd.f32 %v4835_v32, %v3502_v31  ;;  %v3481_v35 = vpop.f32.mrb[17].mxu0 }
 0xc60   : > { %v3504_v36 = vadd.f32 %v3497_v33, %v3481_v35 }
 0xc61   : > { %v3507_v39 = vmax.f32 %v3505_v34, 0.0 }
 0xc62   : > { %v3506_v40 = vmax.f32 %v3504_v36, 0.0 }
 0xc64   : > { %v5240_v42 = vpack.c.bf16 %v3507_v39, %v3506_v40 }
 0xc66   : > { %5241 = vmatpush3.bf16.msra.mxu1 %v5240_v42 }
 0xc67   : > { %5243 = vmatprep.subr.bf16.mxu1 %v5242_v41 }
 0xc69   : > { %4841 = vmatmul.mubr.msk.f32.vlgmr.msra.gmra.mrb[32].mxu1 %vm3515_vm5, %v3508_v43 }
 0xc6a   : > { %3660 = vmatprep.mubr.f32.mxu1 %v5286_v19  ;;  %5245 = vmatpush1.bf16.msra.mxu1 %v5244_v46 }
 0xd3c   : > { %v3585_v48 = vpop.f32.mrb[32].mxu1 }
 0xd3d   : > { %v3586_v49 = vadd.f32 %v3585_v48, %v3513_v47  ;;  %v4842_v50 = vpop.f32.mrb[33].mxu1 }
 0xd3f   : > { %4126 = vmatmul.mubr.msk.f32.vlgmr.msra.gmra.mrb[34].mxu1 %vm3515_vm5, %v3586_v49 }
 0xe12   : > { %v3662_v51 = vpop.f32.mrb[34].mxu1 }
 0xe13   : > { %v3664_v19 = vpop.f32.mrb[35].mxu1 }
 0xe14   : > { %v3669_v52 = vcombine.low %v3662_v51, %v3664_v19 }
 0xe16   : > { %3671 = vst [vmem:[%s359_s23] sm:$0x77] %v3669_v52 }
 0xe17 PF: > { %s20_s13 = sadd.s32 1, %s5284_s13  }
 0xe18   : > { %p17_p4 = scmp.ge.s32.totalorder %s20_s13, 4  }
 0xe1a   :  { %19 = sbr.rel (!%p17_p4) target bundleno = 1 (0x1), region = 122 }

</bundles_post_ra>
